<compile_context>
chip_gen: v6e
topology: v6e:2x2x1
jax: 0.10.0
libtpu: 0.0.40
codegen_flags: <defaults>
</compile_context>

<pallas_src>
import functools

import jax
import jax.numpy as jnp
from jax import lax
from jax.experimental import pallas as pl
from jax.experimental.pallas import tpu as pltpu


# --------------------------------------------------------------------------------------
# Pallas kernel: fc1+tanh, fused input-side gate precompute, GRU scan, post-loop fc3.
# --------------------------------------------------------------------------------------
def _critic_kernel(
    x_ref,      # (T, TB, D)   time-major input tile, compute dtype
    h0_ref,     # (TB, H)      f32
    w1_ref,     # (D, H)       fc1 weight^T, compute dtype
    b1_ref,     # (1, H)       f32
    wih_ref,    # (H, 3H)      GRU W_i^T, gate order [r|z|n], compute dtype
    whh_ref,    # (H, 3H)      GRU W_h^T, compute dtype
    bi_ref,     # (1, 3H)      [b_ir+b_hr | b_iz+b_hz | b_in]   f32
    bhn_ref,    # (1, H)       b_hn   f32
    w3_ref,     # (1, H) if V == 1 else (H, V)    f32
    b3_ref,     # (1, V)       f32
    value_ref,  # out: (T, TB, V)   f32 (time-major)
    hout_ref,   # out: (TB, H)      f32
    gi_ref,     # scratch: (T, TB, 3H)  compute dtype (fused input-side preactivations)
    hseq_ref,   # scratch: (T, TB, H)   f32 (per-step hidden states, for fused fc3)
    *,
    unroll,
):
    T, TB, D = x_ref.shape
    H = h0_ref.shape[-1]
    H2, H3 = 2 * H, 3 * H
    V = value_ref.shape[-1]
    v_is_one = (V == 1)
    cdt = x_ref.dtype

    # ---- fc1 + tanh: one flat 2-D MXU matmul over all (t, b) rows -------------------
    x2 = x_ref[...].reshape(T * TB, D)
    z2 = jnp.tanh(
        jnp.dot(x2, w1_ref[...], preferred_element_type=jnp.float32) + b1_ref[...]
    )

    # ---- fused input-side gate precompute: one (T*TB, H) @ (H, 3H) matmul -----------
    gi = jnp.dot(z2.astype(cdt), wih_ref[...], preferred_element_type=jnp.float32)
    gi = gi + bi_ref[...]
    gi_ref[...] = gi.astype(gi_ref.dtype).reshape(T, TB, H3)

    # ---- hoist loop invariants -------------------------------------------------------
    whh = whh_ref[...]                                  # (H, 3H) compute dtype
    bhn = jnp.broadcast_to(bhn_ref[...], (TB, H))       # (TB, H) f32

    # ---- serial GRU recurrence: ONE fused (TB,H)@(H,3H) MXU push per step -----------
    def step(t, h):
        gh = jnp.dot(h.astype(cdt), whh, preferred_element_type=jnp.float32)
        gi_t = gi_ref[t].astype(jnp.float32)            # leading-dim view, (TB, 3H)
        r = jax.nn.sigmoid(gi_t[:, :H] + gh[:, :H])
        zg = jax.nn.sigmoid(gi_t[:, H:H2] + gh[:, H:H2])
        n = jnp.tanh(gi_t[:, H2:] + r * (gh[:, H2:] + bhn))
        h_new = (1.0 - zg) * n + zg * h
        hseq_ref[t] = h_new                             # stash for post-loop fc3
        return h_new

    h_final = lax.fori_loop(0, T, step, h0_ref[...], unroll=unroll)
    hout_ref[...] = h_final

    # ---- fc3 hoisted out of the loop: one pass + a single store ---------------------
    hs = hseq_ref[...].reshape(T * TB, H)
    if v_is_one:
        # VPU multiply + one big lane reduce instead of T tiny reduces / N=1 matmuls.
        w3_row = jnp.broadcast_to(w3_ref[...], (T * TB, H))
        v = jnp.sum(hs * w3_row, axis=-1, keepdims=True) + b3_ref[...]
    else:
        v = jnp.dot(hs, w3_ref[...], preferred_element_type=jnp.float32) + b3_ref[...]
    value_ref[...] = v.reshape(T, TB, V)


# --------------------------------------------------------------------------------------
# Wrapper
# --------------------------------------------------------------------------------------
def _round_up(a, m):
    return ((a + m - 1) // m) * m


@functools.partial(jax.jit, static_argnames=("batch_tile", "compute_dtype"))
def critic_forward(x, hidden_state, params, batch_tile=None, compute_dtype=jnp.bfloat16):
    """x: (B, T, D_in) float32, hidden_state: (1, B, H) float32 (torch GRU convention)."""
    B, T, D = x.shape
    H = hidden_state.shape[-1]
    V = params["w3"].shape[-1]
    H2, H3 = 2 * H, 3 * H
    cdt = jnp.dtype(compute_dtype)

    # Batch tile: full batch if tiny, otherwise a multiple of 8 chosen so there are at
    # least 2 grid tiles (lets "parallel" shard across v7x's two TensorCores).
    if batch_tile is not None:
        TB = min(batch_tile, B)
    elif B <= 8:
        TB = B
    else:
        TB = min(256, _round_up(pl.cdiv(B, 2), 8))
    num_tiles = pl.cdiv(B, TB)

    # Layout plumbing stays in XLA: the time-major transpose is fused with the cast to
    # compute_dtype so x makes exactly one (narrow) HBM pass before the kernel.
    xt = jnp.transpose(x, (1, 0, 2)).astype(cdt)         # (T, B, D)
    h0 = hidden_state.reshape(B, H).astype(jnp.float32)

    # Pre-cast MXU weights once in the wrapper (halves their DMA + resident VMEM).
    w1 = params["w1"].astype(cdt)                        # (D, H)
    wih = params["wih"].astype(cdt)                      # (H, 3H), gate order [r|z|n]
    whh = params["whh"].astype(cdt)                      # (H, 3H)
    b1 = params["b1"]                                    # (1, H) f32
    bih, bhh = params["bih"], params["bhh"]              # (1, 3H) each, f32
    bi = jnp.concatenate(
        [bih[:, :H] + bhh[:, :H],                        # b_ir + b_hr
         bih[:, H:H2] + bhh[:, H:H2],                    # b_iz + b_hz
         bih[:, H2:]],                                   # b_in
        axis=-1)                                         # (1, 3H)
    bhn = bhh[:, H2:]                                    # (1, H)  (stays inside r*(.))
    w3 = params["w3"]                                    # (H, V) f32
    w3k = w3.reshape(1, H) if V == 1 else w3
    b3 = params["b3"]                                    # (1, V) f32

    bmap3 = lambda i: (0, i, 0)
    bmap2 = lambda i: (i, 0)
    wmap2 = lambda i: (0, 0)

    # TODO(synk): single-buffer the resident-weight BlockSpecs (pipeline_mode=Buffered(1))
    #             once that mode is validated on the target jax version; at large H this
    #             halves resident weight VMEM on v7x.
    in_specs = [
        pl.BlockSpec((T, TB, D), bmap3),     # x (time-major, compute dtype)
        pl.BlockSpec((TB, H), bmap2),        # h0
        pl.BlockSpec((D, H), wmap2),         # w1
        pl.BlockSpec((1, H), wmap2),         # b1
        pl.BlockSpec((H, H3), wmap2),        # wih (fused [r|z|n])
        pl.BlockSpec((H, H3), wmap2),        # whh (fused [r|z|n])
        pl.BlockSpec((1, H3), wmap2),        # bi
        pl.BlockSpec((1, H), wmap2),         # bhn
        pl.BlockSpec(w3k.shape, wmap2),      # w3
        pl.BlockSpec((1, V), wmap2),         # b3
    ]
    out_specs = (
        pl.BlockSpec((T, TB, V), bmap3),     # value (time-major)
        pl.BlockSpec((TB, H), bmap2),        # h_out
    )
    out_shape = (
        jax.ShapeDtypeStruct((T, B, V), jnp.float32),
        jax.ShapeDtypeStruct((B, H), jnp.float32),
    )
    scratch_shapes = [
        pltpu.VMEM((T, TB, H3), cdt),            # fused input-side gate preactivations
        pltpu.VMEM((T, TB, H), jnp.float32),     # per-step hidden states (fused fc3)
    ]

    # Per-tile VMEM footprint estimate -> explicit scoped limit, capped by chip VMEM.
    cs, fs = cdt.itemsize, 4
    weight_bytes = (D * H + 2 * H * H3) * cs + (H + H3 + H + H * V + V) * fs
    io_bytes = T * TB * D * cs + 2 * TB * H * fs + T * TB * V * fs
    scratch_bytes = T * TB * H3 * cs + T * TB * H * fs
    temp_bytes = (T * TB * H + T * TB * H3) * fs + T * TB * D * cs
    est = 2 * (weight_bytes + io_bytes) + scratch_bytes + temp_bytes
    try:
        vmem_cap = int(getattr(pltpu.get_tpu_info(), "vmem_capacity_bytes", 0)) or (64 << 20)
    except Exception:
        vmem_cap = 64 << 20
    vmem_limit = int(min(int(0.8 * vmem_cap), max(32 << 20, 2 * est)))

    # Full unroll only for short sequences; cap it to avoid vreg-spill cliffs at big T.
    unroll = True if T <= 16 else 8
    kernel = functools.partial(_critic_kernel, unroll=unroll)

    value_tm, h_out = pl.pallas_call(
        kernel,
        grid=(num_tiles,),
        in_specs=in_specs,
        out_specs=out_specs,
        out_shape=out_shape,
        scratch_shapes=scratch_shapes,
        compiler_params=pltpu.CompilerParams(
            dimension_semantics=("parallel",),
            vmem_limit_bytes=vmem_limit,
        ),
    )(xt, h0, w1, b1, wih, whh, bi, bhn, w3k, b3)

    value = jnp.transpose(value_tm, (1, 0, 2))       # (B, T, V)  (tiny for V == 1)
    return value, h_out.reshape(1, B, H)


# --------------------------------------------------------------------------------------
# Pure-JAX reference (mirrors torch fc1 -> tanh -> GRU -> fc3 exactly)
# --------------------------------------------------------------------------------------
def _reference_forward(x, hidden_state, params):
    hp = lax.Precision.HIGHEST
    B, T, _ = x.shape
    H = hidden_state.shape[-1]
    z = jnp.tanh(jnp.einsum("btd,dh->bth", x, params["w1"], precision=hp) + params["b1"])
    wih, whh = params["wih"], params["whh"]
    bih, bhh = params["bih"], params["bhh"]
    h = hidden_state.reshape(B, H)
    hs = []
    for t in range(T):
        gi = jnp.dot(z[:, t, :], wih, precision=hp) + bih
        gh = jnp.dot(h, whh, precision=hp) + bhh
        r = jax.nn.sigmoid(gi[:, :H] + gh[:, :H])
        zg = jax.nn.sigmoid(gi[:, H:2 * H] + gh[:, H:2 * H])
        n = jnp.tanh(gi[:, 2 * H:] + r * gh[:, 2 * H:])
        h = (1.0 - zg) * n + zg * h
        hs.append(h)
    hseq = jnp.stack(hs, axis=1)
    value = jnp.einsum("bth,hv->btv", hseq, params["w3"], precision=hp) + params["b3"]
    return value, h.reshape(1, B, H)


# --------------------------------------------------------------------------------------
# Deterministic parameter init (mirrors the module's __init__ / initialize_weights)
# --------------------------------------------------------------------------------------
def _orthogonal(key, rows, cols):
    big, small = max(rows, cols), min(rows, cols)
    a = jax.random.normal(key, (big, small), dtype=jnp.float32)
    q, r = jnp.linalg.qr(a)
    d = jnp.diagonal(r)
    q = q * jnp.where(d == 0, 1.0, jnp.sign(d))
    if rows < cols:
        q = q.T
    return q[:rows, :cols]


def init_params(key, state_dim, observation_dim, action_size, hidden_size, value_dim, num_agents):
    d_in = state_dim + observation_dim + num_agents + action_size * num_agents
    H, V = hidden_size, value_dim
    k1, k2, k3, k4, k5, k6 = jax.random.split(key, 6)

    fc1_w = _orthogonal(k1, H, d_in)          # (H, D_in)   torch layout
    fc3_w = _orthogonal(k2, V, H)             # (V, H)
    bound = 1.0 / jnp.sqrt(jnp.float32(H))    # torch GRU default init
    wih = jax.random.uniform(k3, (3 * H, H), jnp.float32, -bound, bound)
    whh = jax.random.uniform(k4, (3 * H, H), jnp.float32, -bound, bound)
    bih = jax.random.uniform(k5, (3 * H,), jnp.float32, -bound, bound)
    bhh = jax.random.uniform(k6, (3 * H,), jnp.float32, -bound, bound)

    return {
        "w1": fc1_w.T,                         # (D_in, H)
        "b1": jnp.zeros((1, H), jnp.float32),  # fc1 bias = 0
        "wih": wih.T,                          # (H, 3H), gate order [r, z, n]
        "bih": bih.reshape(1, 3 * H),
        "whh": whh.T,                          # (H, 3H)
        "bhh": bhh.reshape(1, 3 * H),
        "w3": fc3_w.T,                         # (H, V)
        "b3": jnp.zeros((1, V), jnp.float32),  # fc3 bias = 0
    }, d_in


# --------------------------------------------------------------------------------------
if __name__ == "__main__":
    state_dim, observation_dim, action_size, num_agents = 8, 8, 3, 2
    hidden_size, value_dim = 32, 1
    B, T = 2, 8

    key = jax.random.PRNGKey(0)
    pkey, xkey, hkey = jax.random.split(key, 3)
    params, d_in = init_params(pkey, state_dim, observation_dim, action_size,
                               hidden_size, value_dim, num_agents)

    x = jax.random.normal(xkey, (B, T, d_in), dtype=jnp.float32)
    hidden_state = jax.random.normal(hkey, (1, B, hidden_size), dtype=jnp.float32)

    value, h_out = critic_forward(x, hidden_state, params)   # bf16 MXU operands, f32 acc
    jax.block_until_ready((value, h_out))

    assert value.shape == (B, T, value_dim)
    assert h_out.shape == (1, B, hidden_size)

    # Correctness check vs. pure-JAX reference (loose tolerance: bf16 MXU operands).
    v_ref, h_ref = _reference_forward(x, hidden_state, params)
    assert jnp.allclose(value, v_ref, atol=5e-2, rtol=5e-2)
    assert jnp.allclose(h_out, h_ref, atol=5e-2, rtol=5e-2)

    print("KERNEL_OK")
</pallas_src>

<mosaic_0001>
module attributes {stable_mosaic.version = 11 : i64} {
  func.func @_critic_kernel(%arg0: i32, %arg1: memref<8x2x24xbf16, #tpu.memory_space<vmem>>, %arg2: memref<2x32xf32, #tpu.memory_space<vmem>>, %arg3: memref<24x32xbf16, #tpu.memory_space<vmem>>, %arg4: memref<1x32xf32, #tpu.memory_space<vmem>>, %arg5: memref<32x96xbf16, #tpu.memory_space<vmem>>, %arg6: memref<32x96xbf16, #tpu.memory_space<vmem>>, %arg7: memref<1x96xf32, #tpu.memory_space<vmem>>, %arg8: memref<1x32xf32, #tpu.memory_space<vmem>>, %arg9: memref<1x32xf32, #tpu.memory_space<vmem>>, %arg10: memref<1x1xf32, #tpu.memory_space<vmem>>, %arg11: memref<8x2x1xf32, #tpu.memory_space<vmem>>, %arg12: memref<2x32xf32, #tpu.memory_space<vmem>>, %arg13: memref<8x2x96xbf16, #tpu.memory_space<vmem>>, %arg14: memref<8x2x32xf32, #tpu.memory_space<vmem>>) attributes {dimension_semantics = [#tpu.dimension_semantics<parallel>], iteration_bounds = array<i64: 1>, scalar_prefetch = 0 : i64, scratch_operands = 2 : i64, tpu.core_type = #tpu.core_type<tc>, window_params = [{transform_indices = @transform_0, window_bounds = array<i64: 8, 2, 24>}, {transform_indices = @transform_1, window_bounds = array<i64: 2, 32>}, {pipeline_mode = #tpu.pipeline_mode<synchronous>, transform_indices = @transform_2, window_bounds = array<i64: 24, 32>}, {pipeline_mode = #tpu.pipeline_mode<synchronous>, transform_indices = @transform_3, window_bounds = array<i64: 1, 32>}, {pipeline_mode = #tpu.pipeline_mode<synchronous>, transform_indices = @transform_4, window_bounds = array<i64: 32, 96>}, {pipeline_mode = #tpu.pipeline_mode<synchronous>, transform_indices = @transform_5, window_bounds = array<i64: 32, 96>}, {pipeline_mode = #tpu.pipeline_mode<synchronous>, transform_indices = @transform_6, window_bounds = array<i64: 1, 96>}, {pipeline_mode = #tpu.pipeline_mode<synchronous>, transform_indices = @transform_7, window_bounds = array<i64: 1, 32>}, {pipeline_mode = #tpu.pipeline_mode<synchronous>, transform_indices = @transform_8, window_bounds = array<i64: 1, 32>}, {pipeline_mode = #tpu.pipeline_mode<synchronous>, transform_indices = @transform_9, window_bounds = array<i64: 1, 1>}, {transform_indices = @transform_10, window_bounds = array<i64: 8, 2, 1>}, {transform_indices = @transform_11, window_bounds = array<i64: 2, 32>}]} {
    %c0 = arith.constant 0 : index
    %c0_0 = arith.constant 0 : index
    %c0_1 = arith.constant 0 : index
    %0 = vector.load %arg1[%c0, %c0_0, %c0_1] : memref<8x2x24xbf16, #tpu.memory_space<vmem>>, vector<8x2x24xbf16>
    %1 = vector.shape_cast %0 : vector<8x2x24xbf16> to vector<16x24xbf16>
    %c0_2 = arith.constant 0 : index
    %c0_3 = arith.constant 0 : index
    %2 = vector.load %arg3[%c0_2, %c0_3] : memref<24x32xbf16, #tpu.memory_space<vmem>>, vector<24x32xbf16>
    %cst = arith.constant dense<0.000000e+00> : vector<16x32xf32>
    %3 = tpu.matmul %1, %2, %cst {dimension_numbers = #tpu.dot_dimension_numbers<[1], [0], [0], [1], [0, 0, 1, 1], [], []>} : vector<16x24xbf16>, vector<24x32xbf16>, vector<16x32xf32> -> vector<16x32xf32>
    %c0_4 = arith.constant 0 : index
    %c0_5 = arith.constant 0 : index
    %4 = vector.load %arg4[%c0_4, %c0_5] : memref<1x32xf32, #tpu.memory_space<vmem>>, vector<1x32xf32>
    %5 = vector.broadcast %4 : vector<1x32xf32> to vector<16x32xf32>
    %6 = arith.addf %3, %5 : vector<16x32xf32>
    %7 = math.tanh %6 : vector<16x32xf32>
    %8 = arith.truncf %7 : vector<16x32xf32> to vector<16x32xbf16>
    %c0_6 = arith.constant 0 : index
    %c0_7 = arith.constant 0 : index
    %9 = vector.load %arg5[%c0_6, %c0_7] : memref<32x96xbf16, #tpu.memory_space<vmem>>, vector<32x96xbf16>
    %cst_8 = arith.constant dense<0.000000e+00> : vector<16x96xf32>
    %10 = tpu.matmul %8, %9, %cst_8 {dimension_numbers = #tpu.dot_dimension_numbers<[1], [0], [0], [1], [0, 0, 1, 1], [], []>} : vector<16x32xbf16>, vector<32x96xbf16>, vector<16x96xf32> -> vector<16x96xf32>
    %c0_9 = arith.constant 0 : index
    %c0_10 = arith.constant 0 : index
    %11 = vector.load %arg7[%c0_9, %c0_10] : memref<1x96xf32, #tpu.memory_space<vmem>>, vector<1x96xf32>
    %12 = vector.broadcast %11 : vector<1x96xf32> to vector<16x96xf32>
    %13 = arith.addf %10, %12 : vector<16x96xf32>
    %14 = arith.truncf %13 : vector<16x96xf32> to vector<16x96xbf16>
    %15 = vector.shape_cast %14 : vector<16x96xbf16> to vector<8x2x96xbf16>
    %c0_11 = arith.constant 0 : index
    %c0_12 = arith.constant 0 : index
    %c0_13 = arith.constant 0 : index
    %16 = vector.load %arg13[%c0_11, %c0_12, %c0_13] : memref<8x2x96xbf16, #tpu.memory_space<vmem>>, vector<8x2x96xbf16>
    tpu.vector_store %arg13[%c0_11, %c0_12, %c0_13], %15 {strides = array<i32>} : memref<8x2x96xbf16, #tpu.memory_space<vmem>>, vector<8x2x96xbf16>,
    %c0_14 = arith.constant 0 : index
    %c0_15 = arith.constant 0 : index
    %17 = vector.load %arg6[%c0_14, %c0_15] : memref<32x96xbf16, #tpu.memory_space<vmem>>, vector<32x96xbf16>
    %c0_16 = arith.constant 0 : index
    %c0_17 = arith.constant 0 : index
    %18 = vector.load %arg8[%c0_16, %c0_17] : memref<1x32xf32, #tpu.memory_space<vmem>>, vector<1x32xf32>
    %19 = vector.shape_cast %18 : vector<1x32xf32> to vector<1x32xf32>
    %20 = vector.broadcast %19 : vector<1x32xf32> to vector<2x32xf32>
    %c0_18 = arith.constant 0 : index
    %c0_19 = arith.constant 0 : index
    %21 = vector.load %arg2[%c0_18, %c0_19] : memref<2x32xf32, #tpu.memory_space<vmem>>, vector<2x32xf32>
    %c0_i32 = arith.constant 0 : i32
    %22 = arith.truncf %21 : vector<2x32xf32> to vector<2x32xbf16>
    %cst_20 = arith.constant dense<0.000000e+00> : vector<2x96xf32>
    %23 = tpu.matmul %22, %17, %cst_20 {dimension_numbers = #tpu.dot_dimension_numbers<[1], [0], [0], [1], [0, 0, 1, 1], [], []>} : vector<2x32xbf16>, vector<32x96xbf16>, vector<2x96xf32> -> vector<2x96xf32>
    %24 = arith.index_cast %c0_i32 : i32 to index
    %c0_21 = arith.constant 0 : index
    %c0_22 = arith.constant 0 : index
    %25 = vector.load %arg13[%24, %c0_21, %c0_22] : memref<8x2x96xbf16, #tpu.memory_space<vmem>>, vector<1x2x96xbf16>
    %26 = vector.shape_cast %25 : vector<1x2x96xbf16> to vector<2x96xbf16>
    %27 = arith.extf %26 : vector<2x96xbf16> to vector<2x96xf32>
    %28 = vector.extract_strided_slice %27 {offsets = [0, 0], sizes = [2, 32], strides = [1, 1]} : vector<2x96xf32> to vector<2x32xf32>
    %29 = vector.extract_strided_slice %23 {offsets = [0, 0], sizes = [2, 32], strides = [1, 1]} : vector<2x96xf32> to vector<2x32xf32>
    %30 = arith.addf %28, %29 : vector<2x32xf32>
    %31 = arith.negf %30 : vector<2x32xf32>
    %32 = math.exp %31 : vector<2x32xf32>
    %cst_23 = arith.constant 1.000000e+00 : f32
    %33 = vector.broadcast %cst_23 : f32 to vector<2x32xf32>
    %34 = arith.addf %33, %32 : vector<2x32xf32>
    %35 = arith.divf %33, %34 : vector<2x32xf32>
    %36 = vector.extract_strided_slice %27 {offsets = [0, 32], sizes = [2, 32], strides = [1, 1]} : vector<2x96xf32> to vector<2x32xf32>
    %37 = vector.extract_strided_slice %23 {offsets = [0, 32], sizes = [2, 32], strides = [1, 1]} : vector<2x96xf32> to vector<2x32xf32>
    %38 = arith.addf %36, %37 : vector<2x32xf32>
    %39 = arith.negf %38 : vector<2x32xf32>
    %40 = math.exp %39 : vector<2x32xf32>
    %cst_24 = arith.constant 1.000000e+00 : f32
    %41 = vector.broadcast %cst_24 : f32 to vector<2x32xf32>
    %42 = arith.addf %41, %40 : vector<2x32xf32>
    %43 = arith.divf %41, %42 : vector<2x32xf32>
    %44 = vector.extract_strided_slice %27 {offsets = [0, 64], sizes = [2, 32], strides = [1, 1]} : vector<2x96xf32> to vector<2x32xf32>
    %45 = vector.extract_strided_slice %23 {offsets = [0, 64], sizes = [2, 32], strides = [1, 1]} : vector<2x96xf32> to vector<2x32xf32>
    %46 = arith.addf %45, %20 : vector<2x32xf32>
    %47 = arith.mulf %35, %46 : vector<2x32xf32>
    %48 = arith.addf %44, %47 : vector<2x32xf32>
    %49 = math.tanh %48 : vector<2x32xf32>
    %cst_25 = arith.constant 1.000000e+00 : f32
    %50 = vector.broadcast %cst_25 : f32 to vector<2x32xf32>
    %51 = arith.subf %50, %43 : vector<2x32xf32>
    %52 = arith.mulf %51, %49 : vector<2x32xf32>
    %53 = arith.mulf %43, %21 : vector<2x32xf32>
    %54 = arith.addf %52, %53 : vector<2x32xf32>
    %55 = arith.index_cast %c0_i32 : i32 to index
    %c0_26 = arith.constant 0 : index
    %c0_27 = arith.constant 0 : index
    %56 = vector.load %arg14[%55, %c0_26, %c0_27] : memref<8x2x32xf32, #tpu.memory_space<vmem>>, vector<1x2x32xf32>
    %57 = vector.shape_cast %56 : vector<1x2x32xf32> to vector<2x32xf32>
    %58 = vector.shape_cast %54 : vector<2x32xf32> to vector<1x2x32xf32>
    tpu.vector_store %arg14[%55, %c0_26, %c0_27], %58 {strides = array<i32>} : memref<8x2x32xf32, #tpu.memory_space<vmem>>, vector<1x2x32xf32>,
    %c1_i32 = arith.constant 1 : i32
    %59 = arith.truncf %54 : vector<2x32xf32> to vector<2x32xbf16>
    %cst_28 = arith.constant dense<0.000000e+00> : vector<2x96xf32>
    %60 = tpu.matmul %59, %17, %cst_28 {dimension_numbers = #tpu.dot_dimension_numbers<[1], [0], [0], [1], [0, 0, 1, 1], [], []>} : vector<2x32xbf16>, vector<32x96xbf16>, vector<2x96xf32> -> vector<2x96xf32>
    %61 = arith.index_cast %c1_i32 : i32 to index
    %c0_29 = arith.constant 0 : index
    %c0_30 = arith.constant 0 : index
    %62 = vector.load %arg13[%61, %c0_29, %c0_30] : memref<8x2x96xbf16, #tpu.memory_space<vmem>>, vector<1x2x96xbf16>
    %63 = vector.shape_cast %62 : vector<1x2x96xbf16> to vector<2x96xbf16>
    %64 = arith.extf %63 : vector<2x96xbf16> to vector<2x96xf32>
    %65 = vector.extract_strided_slice %64 {offsets = [0, 0], sizes = [2, 32], strides = [1, 1]} : vector<2x96xf32> to vector<2x32xf32>
    %66 = vector.extract_strided_slice %60 {offsets = [0, 0], sizes = [2, 32], strides = [1, 1]} : vector<2x96xf32> to vector<2x32xf32>
    %67 = arith.addf %65, %66 : vector<2x32xf32>
    %68 = arith.negf %67 : vector<2x32xf32>
    %69 = math.exp %68 : vector<2x32xf32>
    %cst_31 = arith.constant 1.000000e+00 : f32
    %70 = vector.broadcast %cst_31 : f32 to vector<2x32xf32>
    %71 = arith.addf %70, %69 : vector<2x32xf32>
    %72 = arith.divf %70, %71 : vector<2x32xf32>
    %73 = vector.extract_strided_slice %64 {offsets = [0, 32], sizes = [2, 32], strides = [1, 1]} : vector<2x96xf32> to vector<2x32xf32>
    %74 = vector.extract_strided_slice %60 {offsets = [0, 32], sizes = [2, 32], strides = [1, 1]} : vector<2x96xf32> to vector<2x32xf32>
    %75 = arith.addf %73, %74 : vector<2x32xf32>
    %76 = arith.negf %75 : vector<2x32xf32>
    %77 = math.exp %76 : vector<2x32xf32>
    %cst_32 = arith.constant 1.000000e+00 : f32
    %78 = vector.broadcast %cst_32 : f32 to vector<2x32xf32>
    %79 = arith.addf %78, %77 : vector<2x32xf32>
    %80 = arith.divf %78, %79 : vector<2x32xf32>
    %81 = vector.extract_strided_slice %64 {offsets = [0, 64], sizes = [2, 32], strides = [1, 1]} : vector<2x96xf32> to vector<2x32xf32>
    %82 = vector.extract_strided_slice %60 {offsets = [0, 64], sizes = [2, 32], strides = [1, 1]} : vector<2x96xf32> to vector<2x32xf32>
    %83 = arith.addf %82, %20 : vector<2x32xf32>
    %84 = arith.mulf %72, %83 : vector<2x32xf32>
    %85 = arith.addf %81, %84 : vector<2x32xf32>
    %86 = math.tanh %85 : vector<2x32xf32>
    %cst_33 = arith.constant 1.000000e+00 : f32
    %87 = vector.broadcast %cst_33 : f32 to vector<2x32xf32>
    %88 = arith.subf %87, %80 : vector<2x32xf32>
    %89 = arith.mulf %88, %86 : vector<2x32xf32>
    %90 = arith.mulf %80, %54 : vector<2x32xf32>
    %91 = arith.addf %89, %90 : vector<2x32xf32>
    %92 = arith.index_cast %c1_i32 : i32 to index
    %c0_34 = arith.constant 0 : index
    %c0_35 = arith.constant 0 : index
    %93 = vector.load %arg14[%92, %c0_34, %c0_35] : memref<8x2x32xf32, #tpu.memory_space<vmem>>, vector<1x2x32xf32>
    %94 = vector.shape_cast %93 : vector<1x2x32xf32> to vector<2x32xf32>
    %95 = vector.shape_cast %91 : vector<2x32xf32> to vector<1x2x32xf32>
    tpu.vector_store %arg14[%92, %c0_34, %c0_35], %95 {strides = array<i32>} : memref<8x2x32xf32, #tpu.memory_space<vmem>>, vector<1x2x32xf32>,
    %c2_i32 = arith.constant 2 : i32
    %96 = arith.truncf %91 : vector<2x32xf32> to vector<2x32xbf16>
    %cst_36 = arith.constant dense<0.000000e+00> : vector<2x96xf32>
    %97 = tpu.matmul %96, %17, %cst_36 {dimension_numbers = #tpu.dot_dimension_numbers<[1], [0], [0], [1], [0, 0, 1, 1], [], []>} : vector<2x32xbf16>, vector<32x96xbf16>, vector<2x96xf32> -> vector<2x96xf32>
    %98 = arith.index_cast %c2_i32 : i32 to index
    %c0_37 = arith.constant 0 : index
    %c0_38 = arith.constant 0 : index
    %99 = vector.load %arg13[%98, %c0_37, %c0_38] : memref<8x2x96xbf16, #tpu.memory_space<vmem>>, vector<1x2x96xbf16>
    %100 = vector.shape_cast %99 : vector<1x2x96xbf16> to vector<2x96xbf16>
    %101 = arith.extf %100 : vector<2x96xbf16> to vector<2x96xf32>
    %102 = vector.extract_strided_slice %101 {offsets = [0, 0], sizes = [2, 32], strides = [1, 1]} : vector<2x96xf32> to vector<2x32xf32>
    %103 = vector.extract_strided_slice %97 {offsets = [0, 0], sizes = [2, 32], strides = [1, 1]} : vector<2x96xf32> to vector<2x32xf32>
    %104 = arith.addf %102, %103 : vector<2x32xf32>
    %105 = arith.negf %104 : vector<2x32xf32>
    %106 = math.exp %105 : vector<2x32xf32>
    %cst_39 = arith.constant 1.000000e+00 : f32
    %107 = vector.broadcast %cst_39 : f32 to vector<2x32xf32>
    %108 = arith.addf %107, %106 : vector<2x32xf32>
    %109 = arith.divf %107, %108 : vector<2x32xf32>
    %110 = vector.extract_strided_slice %101 {offsets = [0, 32], sizes = [2, 32], strides = [1, 1]} : vector<2x96xf32> to vector<2x32xf32>
    %111 = vector.extract_strided_slice %97 {offsets = [0, 32], sizes = [2, 32], strides = [1, 1]} : vector<2x96xf32> to vector<2x32xf32>
    %112 = arith.addf %110, %111 : vector<2x32xf32>
    %113 = arith.negf %112 : vector<2x32xf32>
    %114 = math.exp %113 : vector<2x32xf32>
    %cst_40 = arith.constant 1.000000e+00 : f32
    %115 = vector.broadcast %cst_40 : f32 to vector<2x32xf32>
    %116 = arith.addf %115, %114 : vector<2x32xf32>
    %117 = arith.divf %115, %116 : vector<2x32xf32>
    %118 = vector.extract_strided_slice %101 {offsets = [0, 64], sizes = [2, 32], strides = [1, 1]} : vector<2x96xf32> to vector<2x32xf32>
    %119 = vector.extract_strided_slice %97 {offsets = [0, 64], sizes = [2, 32], strides = [1, 1]} : vector<2x96xf32> to vector<2x32xf32>
    %120 = arith.addf %119, %20 : vector<2x32xf32>
    %121 = arith.mulf %109, %120 : vector<2x32xf32>
    %122 = arith.addf %118, %121 : vector<2x32xf32>
    %123 = math.tanh %122 : vector<2x32xf32>
    %cst_41 = arith.constant 1.000000e+00 : f32
    %124 = vector.broadcast %cst_41 : f32 to vector<2x32xf32>
    %125 = arith.subf %124, %117 : vector<2x32xf32>
    %126 = arith.mulf %125, %123 : vector<2x32xf32>
    %127 = arith.mulf %117, %91 : vector<2x32xf32>
    %128 = arith.addf %126, %127 : vector<2x32xf32>
    %129 = arith.index_cast %c2_i32 : i32 to index
    %c0_42 = arith.constant 0 : index
    %c0_43 = arith.constant 0 : index
    %130 = vector.load %arg14[%129, %c0_42, %c0_43] : memref<8x2x32xf32, #tpu.memory_space<vmem>>, vector<1x2x32xf32>
    %131 = vector.shape_cast %130 : vector<1x2x32xf32> to vector<2x32xf32>
    %132 = vector.shape_cast %128 : vector<2x32xf32> to vector<1x2x32xf32>
    tpu.vector_store %arg14[%129, %c0_42, %c0_43], %132 {strides = array<i32>} : memref<8x2x32xf32, #tpu.memory_space<vmem>>, vector<1x2x32xf32>,
    %c3_i32 = arith.constant 3 : i32
    %133 = arith.truncf %128 : vector<2x32xf32> to vector<2x32xbf16>
    %cst_44 = arith.constant dense<0.000000e+00> : vector<2x96xf32>
    %134 = tpu.matmul %133, %17, %cst_44 {dimension_numbers = #tpu.dot_dimension_numbers<[1], [0], [0], [1], [0, 0, 1, 1], [], []>} : vector<2x32xbf16>, vector<32x96xbf16>, vector<2x96xf32> -> vector<2x96xf32>
    %135 = arith.index_cast %c3_i32 : i32 to index
    %c0_45 = arith.constant 0 : index
    %c0_46 = arith.constant 0 : index
    %136 = vector.load %arg13[%135, %c0_45, %c0_46] : memref<8x2x96xbf16, #tpu.memory_space<vmem>>, vector<1x2x96xbf16>
    %137 = vector.shape_cast %136 : vector<1x2x96xbf16> to vector<2x96xbf16>
    %138 = arith.extf %137 : vector<2x96xbf16> to vector<2x96xf32>
    %139 = vector.extract_strided_slice %138 {offsets = [0, 0], sizes = [2, 32], strides = [1, 1]} : vector<2x96xf32> to vector<2x32xf32>
    %140 = vector.extract_strided_slice %134 {offsets = [0, 0], sizes = [2, 32], strides = [1, 1]} : vector<2x96xf32> to vector<2x32xf32>
    %141 = arith.addf %139, %140 : vector<2x32xf32>
    %142 = arith.negf %141 : vector<2x32xf32>
    %143 = math.exp %142 : vector<2x32xf32>
    %cst_47 = arith.constant 1.000000e+00 : f32
    %144 = vector.broadcast %cst_47 : f32 to vector<2x32xf32>
    %145 = arith.addf %144, %143 : vector<2x32xf32>
    %146 = arith.divf %144, %145 : vector<2x32xf32>
    %147 = vector.extract_strided_slice %138 {offsets = [0, 32], sizes = [2, 32], strides = [1, 1]} : vector<2x96xf32> to vector<2x32xf32>
    %148 = vector.extract_strided_slice %134 {offsets = [0, 32], sizes = [2, 32], strides = [1, 1]} : vector<2x96xf32> to vector<2x32xf32>
    %149 = arith.addf %147, %148 : vector<2x32xf32>
    %150 = arith.negf %149 : vector<2x32xf32>
    %151 = math.exp %150 : vector<2x32xf32>
    %cst_48 = arith.constant 1.000000e+00 : f32
    %152 = vector.broadcast %cst_48 : f32 to vector<2x32xf32>
    %153 = arith.addf %152, %151 : vector<2x32xf32>
    %154 = arith.divf %152, %153 : vector<2x32xf32>
    %155 = vector.extract_strided_slice %138 {offsets = [0, 64], sizes = [2, 32], strides = [1, 1]} : vector<2x96xf32> to vector<2x32xf32>
    %156 = vector.extract_strided_slice %134 {offsets = [0, 64], sizes = [2, 32], strides = [1, 1]} : vector<2x96xf32> to vector<2x32xf32>
    %157 = arith.addf %156, %20 : vector<2x32xf32>
    %158 = arith.mulf %146, %157 : vector<2x32xf32>
    %159 = arith.addf %155, %158 : vector<2x32xf32>
    %160 = math.tanh %159 : vector<2x32xf32>
    %cst_49 = arith.constant 1.000000e+00 : f32
    %161 = vector.broadcast %cst_49 : f32 to vector<2x32xf32>
    %162 = arith.subf %161, %154 : vector<2x32xf32>
    %163 = arith.mulf %162, %160 : vector<2x32xf32>
    %164 = arith.mulf %154, %128 : vector<2x32xf32>
    %165 = arith.addf %163, %164 : vector<2x32xf32>
    %166 = arith.index_cast %c3_i32 : i32 to index
    %c0_50 = arith.constant 0 : index
    %c0_51 = arith.constant 0 : index
    %167 = vector.load %arg14[%166, %c0_50, %c0_51] : memref<8x2x32xf32, #tpu.memory_space<vmem>>, vector<1x2x32xf32>
    %168 = vector.shape_cast %167 : vector<1x2x32xf32> to vector<2x32xf32>
    %169 = vector.shape_cast %165 : vector<2x32xf32> to vector<1x2x32xf32>
    tpu.vector_store %arg14[%166, %c0_50, %c0_51], %169 {strides = array<i32>} : memref<8x2x32xf32, #tpu.memory_space<vmem>>, vector<1x2x32xf32>,
    %c4_i32 = arith.constant 4 : i32
    %170 = arith.truncf %165 : vector<2x32xf32> to vector<2x32xbf16>
    %cst_52 = arith.constant dense<0.000000e+00> : vector<2x96xf32>
    %171 = tpu.matmul %170, %17, %cst_52 {dimension_numbers = #tpu.dot_dimension_numbers<[1], [0], [0], [1], [0, 0, 1, 1], [], []>} : vector<2x32xbf16>, vector<32x96xbf16>, vector<2x96xf32> -> vector<2x96xf32>
    %172 = arith.index_cast %c4_i32 : i32 to index
    %c0_53 = arith.constant 0 : index
    %c0_54 = arith.constant 0 : index
    %173 = vector.load %arg13[%172, %c0_53, %c0_54] : memref<8x2x96xbf16, #tpu.memory_space<vmem>>, vector<1x2x96xbf16>
    %174 = vector.shape_cast %173 : vector<1x2x96xbf16> to vector<2x96xbf16>
    %175 = arith.extf %174 : vector<2x96xbf16> to vector<2x96xf32>
    %176 = vector.extract_strided_slice %175 {offsets = [0, 0], sizes = [2, 32], strides = [1, 1]} : vector<2x96xf32> to vector<2x32xf32>
    %177 = vector.extract_strided_slice %171 {offsets = [0, 0], sizes = [2, 32], strides = [1, 1]} : vector<2x96xf32> to vector<2x32xf32>
    %178 = arith.addf %176, %177 : vector<2x32xf32>
    %179 = arith.negf %178 : vector<2x32xf32>
    %180 = math.exp %179 : vector<2x32xf32>
    %cst_55 = arith.constant 1.000000e+00 : f32
    %181 = vector.broadcast %cst_55 : f32 to vector<2x32xf32>
    %182 = arith.addf %181, %180 : vector<2x32xf32>
    %183 = arith.divf %181, %182 : vector<2x32xf32>
    %184 = vector.extract_strided_slice %175 {offsets = [0, 32], sizes = [2, 32], strides = [1, 1]} : vector<2x96xf32> to vector<2x32xf32>
    %185 = vector.extract_strided_slice %171 {offsets = [0, 32], sizes = [2, 32], strides = [1, 1]} : vector<2x96xf32> to vector<2x32xf32>
    %186 = arith.addf %184, %185 : vector<2x32xf32>
    %187 = arith.negf %186 : vector<2x32xf32>
    %188 = math.exp %187 : vector<2x32xf32>
    %cst_56 = arith.constant 1.000000e+00 : f32
    %189 = vector.broadcast %cst_56 : f32 to vector<2x32xf32>
    %190 = arith.addf %189, %188 : vector<2x32xf32>
    %191 = arith.divf %189, %190 : vector<2x32xf32>
    %192 = vector.extract_strided_slice %175 {offsets = [0, 64], sizes = [2, 32], strides = [1, 1]} : vector<2x96xf32> to vector<2x32xf32>
    %193 = vector.extract_strided_slice %171 {offsets = [0, 64], sizes = [2, 32], strides = [1, 1]} : vector<2x96xf32> to vector<2x32xf32>
    %194 = arith.addf %193, %20 : vector<2x32xf32>
    %195 = arith.mulf %183, %194 : vector<2x32xf32>
    %196 = arith.addf %192, %195 : vector<2x32xf32>
    %197 = math.tanh %196 : vector<2x32xf32>
    %cst_57 = arith.constant 1.000000e+00 : f32
    %198 = vector.broadcast %cst_57 : f32 to vector<2x32xf32>
    %199 = arith.subf %198, %191 : vector<2x32xf32>
    %200 = arith.mulf %199, %197 : vector<2x32xf32>
    %201 = arith.mulf %191, %165 : vector<2x32xf32>
    %202 = arith.addf %200, %201 : vector<2x32xf32>
    %203 = arith.index_cast %c4_i32 : i32 to index
    %c0_58 = arith.constant 0 : index
    %c0_59 = arith.constant 0 : index
    %204 = vector.load %arg14[%203, %c0_58, %c0_59] : memref<8x2x32xf32, #tpu.memory_space<vmem>>, vector<1x2x32xf32>
    %205 = vector.shape_cast %204 : vector<1x2x32xf32> to vector<2x32xf32>
    %206 = vector.shape_cast %202 : vector<2x32xf32> to vector<1x2x32xf32>
    tpu.vector_store %arg14[%203, %c0_58, %c0_59], %206 {strides = array<i32>} : memref<8x2x32xf32, #tpu.memory_space<vmem>>, vector<1x2x32xf32>,
    %c5_i32 = arith.constant 5 : i32
    %207 = arith.truncf %202 : vector<2x32xf32> to vector<2x32xbf16>
    %cst_60 = arith.constant dense<0.000000e+00> : vector<2x96xf32>
    %208 = tpu.matmul %207, %17, %cst_60 {dimension_numbers = #tpu.dot_dimension_numbers<[1], [0], [0], [1], [0, 0, 1, 1], [], []>} : vector<2x32xbf16>, vector<32x96xbf16>, vector<2x96xf32> -> vector<2x96xf32>
    %209 = arith.index_cast %c5_i32 : i32 to index
    %c0_61 = arith.constant 0 : index
    %c0_62 = arith.constant 0 : index
    %210 = vector.load %arg13[%209, %c0_61, %c0_62] : memref<8x2x96xbf16, #tpu.memory_space<vmem>>, vector<1x2x96xbf16>
    %211 = vector.shape_cast %210 : vector<1x2x96xbf16> to vector<2x96xbf16>
    %212 = arith.extf %211 : vector<2x96xbf16> to vector<2x96xf32>
    %213 = vector.extract_strided_slice %212 {offsets = [0, 0], sizes = [2, 32], strides = [1, 1]} : vector<2x96xf32> to vector<2x32xf32>
    %214 = vector.extract_strided_slice %208 {offsets = [0, 0], sizes = [2, 32], strides = [1, 1]} : vector<2x96xf32> to vector<2x32xf32>
    %215 = arith.addf %213, %214 : vector<2x32xf32>
    %216 = arith.negf %215 : vector<2x32xf32>
    %217 = math.exp %216 : vector<2x32xf32>
    %cst_63 = arith.constant 1.000000e+00 : f32
    %218 = vector.broadcast %cst_63 : f32 to vector<2x32xf32>
    %219 = arith.addf %218, %217 : vector<2x32xf32>
    %220 = arith.divf %218, %219 : vector<2x32xf32>
    %221 = vector.extract_strided_slice %212 {offsets = [0, 32], sizes = [2, 32], strides = [1, 1]} : vector<2x96xf32> to vector<2x32xf32>
    %222 = vector.extract_strided_slice %208 {offsets = [0, 32], sizes = [2, 32], strides = [1, 1]} : vector<2x96xf32> to vector<2x32xf32>
    %223 = arith.addf %221, %222 : vector<2x32xf32>
    %224 = arith.negf %223 : vector<2x32xf32>
    %225 = math.exp %224 : vector<2x32xf32>
    %cst_64 = arith.constant 1.000000e+00 : f32
    %226 = vector.broadcast %cst_64 : f32 to vector<2x32xf32>
    %227 = arith.addf %226, %225 : vector<2x32xf32>
    %228 = arith.divf %226, %227 : vector<2x32xf32>
    %229 = vector.extract_strided_slice %212 {offsets = [0, 64], sizes = [2, 32], strides = [1, 1]} : vector<2x96xf32> to vector<2x32xf32>
    %230 = vector.extract_strided_slice %208 {offsets = [0, 64], sizes = [2, 32], strides = [1, 1]} : vector<2x96xf32> to vector<2x32xf32>
    %231 = arith.addf %230, %20 : vector<2x32xf32>
    %232 = arith.mulf %220, %231 : vector<2x32xf32>
    %233 = arith.addf %229, %232 : vector<2x32xf32>
    %234 = math.tanh %233 : vector<2x32xf32>
    %cst_65 = arith.constant 1.000000e+00 : f32
    %235 = vector.broadcast %cst_65 : f32 to vector<2x32xf32>
    %236 = arith.subf %235, %228 : vector<2x32xf32>
    %237 = arith.mulf %236, %234 : vector<2x32xf32>
    %238 = arith.mulf %228, %202 : vector<2x32xf32>
    %239 = arith.addf %237, %238 : vector<2x32xf32>
    %240 = arith.index_cast %c5_i32 : i32 to index
    %c0_66 = arith.constant 0 : index
    %c0_67 = arith.constant 0 : index
    %241 = vector.load %arg14[%240, %c0_66, %c0_67] : memref<8x2x32xf32, #tpu.memory_space<vmem>>, vector<1x2x32xf32>
    %242 = vector.shape_cast %241 : vector<1x2x32xf32> to vector<2x32xf32>
    %243 = vector.shape_cast %239 : vector<2x32xf32> to vector<1x2x32xf32>
    tpu.vector_store %arg14[%240, %c0_66, %c0_67], %243 {strides = array<i32>} : memref<8x2x32xf32, #tpu.memory_space<vmem>>, vector<1x2x32xf32>,
    %c6_i32 = arith.constant 6 : i32
    %244 = arith.truncf %239 : vector<2x32xf32> to vector<2x32xbf16>
    %cst_68 = arith.constant dense<0.000000e+00> : vector<2x96xf32>
    %245 = tpu.matmul %244, %17, %cst_68 {dimension_numbers = #tpu.dot_dimension_numbers<[1], [0], [0], [1], [0, 0, 1, 1], [], []>} : vector<2x32xbf16>, vector<32x96xbf16>, vector<2x96xf32> -> vector<2x96xf32>
    %246 = arith.index_cast %c6_i32 : i32 to index
    %c0_69 = arith.constant 0 : index
    %c0_70 = arith.constant 0 : index
    %247 = vector.load %arg13[%246, %c0_69, %c0_70] : memref<8x2x96xbf16, #tpu.memory_space<vmem>>, vector<1x2x96xbf16>
    %248 = vector.shape_cast %247 : vector<1x2x96xbf16> to vector<2x96xbf16>
    %249 = arith.extf %248 : vector<2x96xbf16> to vector<2x96xf32>
    %250 = vector.extract_strided_slice %249 {offsets = [0, 0], sizes = [2, 32], strides = [1, 1]} : vector<2x96xf32> to vector<2x32xf32>
    %251 = vector.extract_strided_slice %245 {offsets = [0, 0], sizes = [2, 32], strides = [1, 1]} : vector<2x96xf32> to vector<2x32xf32>
    %252 = arith.addf %250, %251 : vector<2x32xf32>
    %253 = arith.negf %252 : vector<2x32xf32>
    %254 = math.exp %253 : vector<2x32xf32>
    %cst_71 = arith.constant 1.000000e+00 : f32
    %255 = vector.broadcast %cst_71 : f32 to vector<2x32xf32>
    %256 = arith.addf %255, %254 : vector<2x32xf32>
    %257 = arith.divf %255, %256 : vector<2x32xf32>
    %258 = vector.extract_strided_slice %249 {offsets = [0, 32], sizes = [2, 32], strides = [1, 1]} : vector<2x96xf32> to vector<2x32xf32>
    %259 = vector.extract_strided_slice %245 {offsets = [0, 32], sizes = [2, 32], strides = [1, 1]} : vector<2x96xf32> to vector<2x32xf32>
    %260 = arith.addf %258, %259 : vector<2x32xf32>
    %261 = arith.negf %260 : vector<2x32xf32>
    %262 = math.exp %261 : vector<2x32xf32>
    %cst_72 = arith.constant 1.000000e+00 : f32
    %263 = vector.broadcast %cst_72 : f32 to vector<2x32xf32>
    %264 = arith.addf %263, %262 : vector<2x32xf32>
    %265 = arith.divf %263, %264 : vector<2x32xf32>
    %266 = vector.extract_strided_slice %249 {offsets = [0, 64], sizes = [2, 32], strides = [1, 1]} : vector<2x96xf32> to vector<2x32xf32>
    %267 = vector.extract_strided_slice %245 {offsets = [0, 64], sizes = [2, 32], strides = [1, 1]} : vector<2x96xf32> to vector<2x32xf32>
    %268 = arith.addf %267, %20 : vector<2x32xf32>
    %269 = arith.mulf %257, %268 : vector<2x32xf32>
    %270 = arith.addf %266, %269 : vector<2x32xf32>
    %271 = math.tanh %270 : vector<2x32xf32>
    %cst_73 = arith.constant 1.000000e+00 : f32
    %272 = vector.broadcast %cst_73 : f32 to vector<2x32xf32>
    %273 = arith.subf %272, %265 : vector<2x32xf32>
    %274 = arith.mulf %273, %271 : vector<2x32xf32>
    %275 = arith.mulf %265, %239 : vector<2x32xf32>
    %276 = arith.addf %274, %275 : vector<2x32xf32>
    %277 = arith.index_cast %c6_i32 : i32 to index
    %c0_74 = arith.constant 0 : index
    %c0_75 = arith.constant 0 : index
    %278 = vector.load %arg14[%277, %c0_74, %c0_75] : memref<8x2x32xf32, #tpu.memory_space<vmem>>, vector<1x2x32xf32>
    %279 = vector.shape_cast %278 : vector<1x2x32xf32> to vector<2x32xf32>
    %280 = vector.shape_cast %276 : vector<2x32xf32> to vector<1x2x32xf32>
    tpu.vector_store %arg14[%277, %c0_74, %c0_75], %280 {strides = array<i32>} : memref<8x2x32xf32, #tpu.memory_space<vmem>>, vector<1x2x32xf32>,
    %c7_i32 = arith.constant 7 : i32
    %281 = arith.truncf %276 : vector<2x32xf32> to vector<2x32xbf16>
    %cst_76 = arith.constant dense<0.000000e+00> : vector<2x96xf32>
    %282 = tpu.matmul %281, %17, %cst_76 {dimension_numbers = #tpu.dot_dimension_numbers<[1], [0], [0], [1], [0, 0, 1, 1], [], []>} : vector<2x32xbf16>, vector<32x96xbf16>, vector<2x96xf32> -> vector<2x96xf32>
    %283 = arith.index_cast %c7_i32 : i32 to index
    %c0_77 = arith.constant 0 : index
    %c0_78 = arith.constant 0 : index
    %284 = vector.load %arg13[%283, %c0_77, %c0_78] : memref<8x2x96xbf16, #tpu.memory_space<vmem>>, vector<1x2x96xbf16>
    %285 = vector.shape_cast %284 : vector<1x2x96xbf16> to vector<2x96xbf16>
    %286 = arith.extf %285 : vector<2x96xbf16> to vector<2x96xf32>
    %287 = vector.extract_strided_slice %286 {offsets = [0, 0], sizes = [2, 32], strides = [1, 1]} : vector<2x96xf32> to vector<2x32xf32>
    %288 = vector.extract_strided_slice %282 {offsets = [0, 0], sizes = [2, 32], strides = [1, 1]} : vector<2x96xf32> to vector<2x32xf32>
    %289 = arith.addf %287, %288 : vector<2x32xf32>
    %290 = arith.negf %289 : vector<2x32xf32>
    %291 = math.exp %290 : vector<2x32xf32>
    %cst_79 = arith.constant 1.000000e+00 : f32
    %292 = vector.broadcast %cst_79 : f32 to vector<2x32xf32>
    %293 = arith.addf %292, %291 : vector<2x32xf32>
    %294 = arith.divf %292, %293 : vector<2x32xf32>
    %295 = vector.extract_strided_slice %286 {offsets = [0, 32], sizes = [2, 32], strides = [1, 1]} : vector<2x96xf32> to vector<2x32xf32>
    %296 = vector.extract_strided_slice %282 {offsets = [0, 32], sizes = [2, 32], strides = [1, 1]} : vector<2x96xf32> to vector<2x32xf32>
    %297 = arith.addf %295, %296 : vector<2x32xf32>
    %298 = arith.negf %297 : vector<2x32xf32>
    %299 = math.exp %298 : vector<2x32xf32>
    %cst_80 = arith.constant 1.000000e+00 : f32
    %300 = vector.broadcast %cst_80 : f32 to vector<2x32xf32>
    %301 = arith.addf %300, %299 : vector<2x32xf32>
    %302 = arith.divf %300, %301 : vector<2x32xf32>
    %303 = vector.extract_strided_slice %286 {offsets = [0, 64], sizes = [2, 32], strides = [1, 1]} : vector<2x96xf32> to vector<2x32xf32>
    %304 = vector.extract_strided_slice %282 {offsets = [0, 64], sizes = [2, 32], strides = [1, 1]} : vector<2x96xf32> to vector<2x32xf32>
    %305 = arith.addf %304, %20 : vector<2x32xf32>
    %306 = arith.mulf %294, %305 : vector<2x32xf32>
    %307 = arith.addf %303, %306 : vector<2x32xf32>
    %308 = math.tanh %307 : vector<2x32xf32>
    %cst_81 = arith.constant 1.000000e+00 : f32
    %309 = vector.broadcast %cst_81 : f32 to vector<2x32xf32>
    %310 = arith.subf %309, %302 : vector<2x32xf32>
    %311 = arith.mulf %310, %308 : vector<2x32xf32>
    %312 = arith.mulf %302, %276 : vector<2x32xf32>
    %313 = arith.addf %311, %312 : vector<2x32xf32>
    %314 = arith.index_cast %c7_i32 : i32 to index
    %c0_82 = arith.constant 0 : index
    %c0_83 = arith.constant 0 : index
    %315 = vector.load %arg14[%314, %c0_82, %c0_83] : memref<8x2x32xf32, #tpu.memory_space<vmem>>, vector<1x2x32xf32>
    %316 = vector.shape_cast %315 : vector<1x2x32xf32> to vector<2x32xf32>
    %317 = vector.shape_cast %313 : vector<2x32xf32> to vector<1x2x32xf32>
    tpu.vector_store %arg14[%314, %c0_82, %c0_83], %317 {strides = array<i32>} : memref<8x2x32xf32, #tpu.memory_space<vmem>>, vector<1x2x32xf32>,
    %c8_i32 = arith.constant 8 : i32
    %c0_84 = arith.constant 0 : index
    %c0_85 = arith.constant 0 : index
    %318 = vector.load %arg12[%c0_84, %c0_85] : memref<2x32xf32, #tpu.memory_space<vmem>>, vector<2x32xf32>
    tpu.vector_store %arg12[%c0_84, %c0_85], %313 {strides = array<i32>} : memref<2x32xf32, #tpu.memory_space<vmem>>, vector<2x32xf32>,
    %c0_86 = arith.constant 0 : index
    %c0_87 = arith.constant 0 : index
    %c0_88 = arith.constant 0 : index
    %319 = vector.load %arg14[%c0_86, %c0_87, %c0_88] : memref<8x2x32xf32, #tpu.memory_space<vmem>>, vector<8x2x32xf32>
    %320 = vector.shape_cast %319 : vector<8x2x32xf32> to vector<16x32xf32>
    %c0_89 = arith.constant 0 : index
    %c0_90 = arith.constant 0 : index
    %321 = vector.load %arg9[%c0_89, %c0_90] : memref<1x32xf32, #tpu.memory_space<vmem>>, vector<1x32xf32>
    %322 = vector.shape_cast %321 : vector<1x32xf32> to vector<1x32xf32>
    %323 = vector.broadcast %322 : vector<1x32xf32> to vector<16x32xf32>
    %324 = arith.mulf %320, %323 : vector<16x32xf32>
    %cst_91 = arith.constant dense<0.000000e+00> : vector<16xf32>
    %325 = vector.multi_reduction <add>, %324, %cst_91 [1] : vector<16x32xf32> to vector<16xf32>
    %326 = vector.shape_cast %325 : vector<16xf32> to vector<16x1xf32>
    %c0_92 = arith.constant 0 : index
    %c0_93 = arith.constant 0 : index
    %327 = vector.load %arg10[%c0_92, %c0_93] : memref<1x1xf32, #tpu.memory_space<vmem>>, vector<1x1xf32>
    %328 = vector.broadcast %327 : vector<1x1xf32> to vector<16x1xf32>
    %329 = arith.addf %326, %328 : vector<16x1xf32>
    %330 = vector.shape_cast %329 : vector<16x1xf32> to vector<8x2x1xf32>
    %c0_94 = arith.constant 0 : index
    %c0_95 = arith.constant 0 : index
    %c0_96 = arith.constant 0 : index
    %331 = vector.load %arg11[%c0_94, %c0_95, %c0_96] : memref<8x2x1xf32, #tpu.memory_space<vmem>>, vector<8x2x1xf32>
    tpu.vector_store %arg11[%c0_94, %c0_95, %c0_96], %330 {strides = array<i32>} : memref<8x2x1xf32, #tpu.memory_space<vmem>>, vector<8x2x1xf32>,
    return
  }
  func.func @transform_0(%arg0: i32) -> (i32, i32, i32) {
    %c0_i32 = arith.constant 0 : i32
    %c0_i32_0 = arith.constant 0 : i32
    %c0_i32_1 = arith.constant 0 : i32
    return %c0_i32, %arg0, %c0_i32_0 : i32, i32, i32
  }
  func.func @transform_1(%arg0: i32) -> (i32, i32) {
    %c0_i32 = arith.constant 0 : i32
    %c0_i32_0 = arith.constant 0 : i32
    return %arg0, %c0_i32 : i32, i32
  }
  func.func @transform_2(%arg0: i32) -> (i32, i32) {
    %c0_i32 = arith.constant 0 : i32
    %c0_i32_0 = arith.constant 0 : i32
    %c0_i32_1 = arith.constant 0 : i32
    return %c0_i32, %c0_i32_0 : i32, i32
  }
  func.func @transform_3(%arg0: i32) -> (i32, i32) {
    %c0_i32 = arith.constant 0 : i32
    %c0_i32_0 = arith.constant 0 : i32
    %c0_i32_1 = arith.constant 0 : i32
    return %c0_i32, %c0_i32_0 : i32, i32
  }
  func.func @transform_4(%arg0: i32) -> (i32, i32) {
    %c0_i32 = arith.constant 0 : i32
    %c0_i32_0 = arith.constant 0 : i32
    %c0_i32_1 = arith.constant 0 : i32
    return %c0_i32, %c0_i32_0 : i32, i32
  }
  func.func @transform_5(%arg0: i32) -> (i32, i32) {
    %c0_i32 = arith.constant 0 : i32
    %c0_i32_0 = arith.constant 0 : i32
    %c0_i32_1 = arith.constant 0 : i32
    return %c0_i32, %c0_i32_0 : i32, i32
  }
  func.func @transform_6(%arg0: i32) -> (i32, i32) {
    %c0_i32 = arith.constant 0 : i32
    %c0_i32_0 = arith.constant 0 : i32
    %c0_i32_1 = arith.constant 0 : i32
    return %c0_i32, %c0_i32_0 : i32, i32
  }
  func.func @transform_7(%arg0: i32) -> (i32, i32) {
    %c0_i32 = arith.constant 0 : i32
    %c0_i32_0 = arith.constant 0 : i32
    %c0_i32_1 = arith.constant 0 : i32
    return %c0_i32, %c0_i32_0 : i32, i32
  }
  func.func @transform_8(%arg0: i32) -> (i32, i32) {
    %c0_i32 = arith.constant 0 : i32
    %c0_i32_0 = arith.constant 0 : i32
    %c0_i32_1 = arith.constant 0 : i32
    return %c0_i32, %c0_i32_0 : i32, i32
  }
  func.func @transform_9(%arg0: i32) -> (i32, i32) {
    %c0_i32 = arith.constant 0 : i32
    %c0_i32_0 = arith.constant 0 : i32
    %c0_i32_1 = arith.constant 0 : i32
    return %c0_i32, %c0_i32_0 : i32, i32
  }
  func.func @transform_10(%arg0: i32) -> (i32, i32, i32) {
    %c0_i32 = arith.constant 0 : i32
    %c0_i32_0 = arith.constant 0 : i32
    %c0_i32_1 = arith.constant 0 : i32
    return %c0_i32, %arg0, %c0_i32_0 : i32, i32, i32
  }
  func.func @transform_11(%arg0: i32) -> (i32, i32) {
    %c0_i32 = arith.constant 0 : i32
    %c0_i32_0 = arith.constant 0 : i32
    return %arg0, %c0_i32 : i32, i32
  }
}

</mosaic_0001>

<bundles_post_ra>
// kernel: critic_forward.1
= control target key start
LH: loop header
LB: loop body
LE: loop exit
PB: predicated region body
PF: predicated region fallthrough
CT: control target
= control target key end

     0   :  { %s1904_s0 = inlined_call_operand.vmem [shape: bf16[8,2,24], index: 0, kind: input, shape index: {}]   ;;  %s1905_s1 = inlined_call_operand.vmem [shape: f32[2,32], index: 1, kind: input, shape index: {}]   ;;  %s1906_s2 = inlined_call_operand.vmem [shape: bf16[24,32], index: 2, kind: input, shape index: {}]   ;;  %s1907_s3 = inlined_call_operand.vmem [shape: f32[1,32], index: 3, kind: input, shape index: {}]   ;;  %s1908_s4 = inlined_call_operand.vmem [shape: bf16[32,96], index: 4, kind: input, shape index: {}]   ;;  %s1909_s5 = inlined_call_operand.vmem [shape: bf16[32,96], index: 5, kind: input, shape index: {}]   ;;  %s1910_s6 = inlined_call_operand.vmem [shape: f32[1,96], index: 6, kind: input, shape index: {}]   ;;  %s1911_s7 = inlined_call_operand.vmem [shape: f32[1,32], index: 7, kind: input, shape index: {}]   ;;  %s1912_s8 = inlined_call_operand.vmem [shape: f32[1,32], index: 8, kind: input, shape index: {}]   ;;  %s1913_s9 = inlined_call_operand.<no memory space> [shape: f32[1,1], index: 9, kind: input, shape index: {}]   ;;  %s1914_s10 = inlined_call_operand.vmem [shape: f32[8,2,1], index: 10, kind: output, shape index: {0}]   ;;  %s1915_s11 = inlined_call_operand.hbm [shape: f32[2,32], index: 11, kind: output, shape index: {1}]  }
   0x1   :  { %v17_v0 = vstv %s1913_s9 }
   0x2   :  { %18 = vst [vmem:[#allocation4] sm:$0x1] %v17_v0 }
   0x3   :  { %v1444_v1 = vld [vmem:[%s1906_s2 + $0x8] ss:$0 sps:$4 sm:$0xff]   ;;  %vm129_vm0 = vcmask 1043456   ;;  %v1524_v2 = vmov 0.0   ;;  %v1445_v4 = vld [vmem:[%s1906_s2] sm:$0xff]   ;;  %vm1525_vm1 = vmmov 0   ;;  %v74_v6 = vlaneseq }
   0x4   :  { %1356 = vmatprep.subr.bf16.mxu0 %v1524_v2  ;;  %1364 = vmatprep.subr.bf16.mxu1 %v1524_v2  ;;  %v131_v3 = vsel %vm129_vm0, %v1444_v1, 0  ;;  %v41_v5 = vld [vmem:[%s1904_s0] sm:$0x1]  ;;  %v42_v7 = vld [vmem:[%s1904_s0 + $0x1] sm:$0x1] }
   0x5   :  { %1360 = vmatprep.mubr.msk.bf16.mxu0 %vm1525_vm1, %v1524_v2  ;;  %1368 = vmatprep.mubr.msk.bf16.mxu1 %vm1525_vm1, %v1524_v2  ;;  %v43_v8 = vld [vmem:[%s1904_s0 + $0x2] sm:$0x1]  ;;  %v44_v9 = vld [vmem:[%s1904_s0 + $0x3] sm:$0x1]  ;;  %v45_v10 = vld [vmem:[%s1904_s0 + $0x4] sm:$0x1]  ;;  %v67_v17 = vcombine.low %v41_v5, %v42_v7 }
   0x6   :  { %1357 = vmatpush3.bf16.msra.mxu0 %v131_v3  ;;  %v46_v11 = vld [vmem:[%s1904_s0 + $0x5] sm:$0x1]  ;;  %v47_v12 = vld [vmem:[%s1904_s0 + $0x6] sm:$0x1]  ;;  %v48_v13 = vld [vmem:[%s1904_s0 + $0x7] sm:$0x1]  ;;  %v68_v18 = vcombine.low %v43_v8, %v44_v9 }
   0x7   :  { %1358 = vmatprep.subr.bf16.mxu0 %v1524_v2  ;;  %v1526_v14 = vmov 1966171168   ;;  %v75_v16 = vshrl.u32 %v74_v6, 7  ;;  %v69_v19 = vcombine.low %v45_v10, %v46_v11  ;;  %v70_v20 = vcombine.low %v47_v12, %v48_v13 }
   0x8   :  { %v72_v15 = vunpack.c.l.s4 %v1526_v14 }
   0xa   :  { %1359 = vmatpush3.bf16.msra.mxu0 %v1445_v4  ;;  %v73_v21 = vunpack.c.0.s8 %v72_v15 }
   0xb   :  { %1372 = vmatprep.subr.bf16.mxu0 %v1524_v2 }
   0xc   :  { %19 = vsyncpa [#allocation6], 0  ;;  %v1633_v22 = vsub.s32 %v73_v21, %v75_v16  ;;  %vm125_vm2 = vcmask 195584   ;;  %v1644_v31 = vld [vmem:[%s1909_s5 + $0x8] sm:$0xff]   ;;  %v1650_v33 = vld [vmem:[%s1909_s5] sm:$0xff]   ;;  %vm200_vm3 = vcmask 261120  }
   0xd   :  { %v323_v34 = vld [vmem:[%s1905_s1] sm:$0x3]  ;;  %v1448_v36 = vld [vmem:[%s1908_s4 + $0x8] sm:$0xff]   ;;  %s1527_s26 = smov 64   ;;  %v1528_v41 = vmov 1983009808  }
   0xe   :  { %v77_v23 = vrot.slane %v67_v17, %v1633_v22  ;;  %v84_v24 = vrot.slane %v68_v18, %v1633_v22  ;;  %v91_v25 = vrot.slane %v69_v19, %v1633_v22  ;;  %v98_v26 = vrot.slane %v70_v20, %v1633_v22  ;;  %1365 = vmatpush3.bf16.msra.mxu1 %v1448_v36  ;;  %v1449_v37 = vld [vmem:[%s1908_s4] sm:$0xff]  }
   0xf   :  { %v324_v35 = vpack.c.bf16 %v323_v34, %v323_v34  ;;  %1366 = vmatprep.subr.bf16.mxu1 %v1524_v2  ;;  %v1305_v38 = vld [vmem:[%s1911_s7] ss:$0 sm:$0xff]  ;;  %v395_v42 = vunpack.c.l.s4 %v1528_v41  ;;  %vm304_vm4 = vcmask 778240   ;;  %vm441_vm5 = vcmask 254976  }
  0x10   :  { %v99_v27 = vcombine.low %v77_v23, %v84_v24  ;;  %v100_v28 = vcombine.low %v91_v25, %v98_v26  ;;  %389 = vrot.lane.b32.xlu0 %v1305_v38, %s1527_s26  ;;  %v1296_v39 = vld [vmem:[%s1907_s3] ss:$0 sm:$0xff]  ;;  %s1529_s3 = smov 32  }
  0x11   :  { %v396_v46 = vunpack.c.0.s8 %v395_v42  ;;  %v1300_v62 = vld [vmem:[%s1910_s6] ss:$0 sm:$0xff]  ;;  %s1530_s6 = smov 96  }
  0x12   :  { %v107_v29 = vrot.slane %v99_v27, %v1633_v22  ;;  %v114_v30 = vrot.slane %v100_v28, %v1633_v22  ;;  %1367 = vmatpush3.bf16.msra.mxu1 %v1449_v37 }
  0x13   :  { %1380 = vmatprep.subr.bf16.mxu1 %v1524_v2  ;;  %v1682_v50 = vsub.s32 %v396_v46, %v75_v16 }
  0x14   :  { %v115_v32 = vcombine.low %v107_v29, %v114_v30 }
  0x15   :  { %v424_v57 = vrot.slane %v323_v34, %v1682_v50 }
  0x16   :  { %1361 = vmatmul.mubr.msk.bf16.vlgmr.msra.gmra.mxu0 %vm125_vm2, %v115_v32 }
  0x17   :  { %1373 = vmatpush3.bf16.msra.mxu0 %v1644_v31  ;;  %1376 = vmatprep.mubr.msk.bf16.mxu0 %vm1525_vm1, %v1524_v2 }
  0x18   :  { %1374 = vmatprep.subr.bf16.mxu0 %v1524_v2 }
  0x1b   :  { %1375 = vmatpush3.bf16.msra.mxu0 %v1650_v33 }
  0x1c   :  { %1388 = vmatprep.subr.bf16.mxu0 %v1524_v2 }
  0x1e   :  { %1377 = vmatmul.mubr.msk.bf16.vlgmr.msra.gmra.mxu0 %vm200_vm3, %v324_v35 }
  0x1f   :  { %1389 = vmatpush3.bf16.msra.mxu0 %v1644_v31  ;;  %1392 = vmatprep.mubr.msk.bf16.mxu0 %vm1525_vm1, %v1524_v2 }
  0x20   :  { %1390 = vmatprep.subr.bf16.mxu0 %v1524_v2 }
  0x23   :  { %1391 = vmatpush3.bf16.msra.mxu0 %v1650_v33 }
  0x24   :  { %1404 = vmatprep.subr.bf16.mxu0 %v1524_v2 }
  0x82   :  { %v1684_v51 = vpop.permute.xlu0 %389 }
  0xd6   :  { %v167_v40 = vpop.f32.mrf.mxu0 }
  0xd7   :  { %v168_v43 = vadd.f32 %v1296_v39, %v167_v40 }
  0xd8   :  { %v1362_v44 = vpop.f32.mrf.mxu0 }
  0xd9   :  { %1450 = vtanh.f32 %v168_v43 }
  0xda   :  { %v170_v45 = vpop.f32.mrf.mxu0 }
  0xdb   :  { %v171_v47 = vadd.f32 %v1296_v39, %v170_v45 }
  0xdc   :  { %v1363_v48 = vpop.f32.mrf.mxu0 }
  0xdd   :  { %1452 = vtanh.f32 %v171_v47 }
  0xde   :  { %v374_v49 = vpop.f32.mrf.mxu0 }
  0xdf   :  { %v392_v53 = vadd.f32 %v1684_v51, %v374_v49 }
  0xe0   :  { %v1378_v52 = vpop.f32.mrf.mxu0 }
  0xe1   :  { %v400_v55 = vrot.slane %v392_v53, %v1682_v50 }
  0xe2   :  { %v377_v54 = vpop.f32.mrf.mxu0 }
  0xe3   :  { %401 = vrot.lane.b32.xlu0 %v400_v55, %s1527_s26 }
  0xe4   :  { %v1379_v56 = vpop.f32.mrf.mxu0 }
  0xe6   :  { %v1451_v58 = vpop.eup %1450 }
  0xe7   :  { %425 = vrot.lane.b32.xlu0 %v424_v57, %s1529_s3 }
  0xea   :  { %v1453_v59 = vpop.eup %1452 }
  0xeb   :  { %v176_v60 = vpack.c.bf16 %v1453_v59, %v1451_v58 }
  0xed   :  { %1369 = vmatmul.mubr.msk.bf16.vlgmr.msra.gmra.mxu1 %vm200_vm3, %v176_v60 }
  0xee   :  { %1381 = vmatpush3.bf16.msra.mxu1 %v1644_v31  ;;  %1384 = vmatprep.mubr.msk.bf16.mxu1 %vm1525_vm1, %v1524_v2 }
  0xef   :  { %1382 = vmatprep.subr.bf16.mxu1 %v1524_v2 }
  0xf2   :  { %1383 = vmatpush3.bf16.msra.mxu1 %v1650_v33 }
  0xf3   :  { %1396 = vmatprep.subr.bf16.mxu1 %v1524_v2 }
 0x155   :  { %v402_v26 = vpop.permute.xlu0 %401 }
 0x159   :  { %v426_v32 = vpop.permute.xlu0 %425 }
 0x1ad   :  { %v238_v61 = vpop.f32.mrf.mxu1 }
 0x1ae   :  { %v239_v1 = vadd.f32 %v1300_v62, %v238_v61 }
 0x1af   :  { %v1370_v63 = vpop.f32.mrf.mxu1 }
 0x1b1   :  { %v241_v0 = vpop.f32.mrf.mxu1 }
 0x1b2   :  { %v242_v3 = vadd.f32 %v1300_v62, %v241_v0 }
 0x1b3   :  { %v1371_v4 = vpop.f32.mrf.mxu1 }
 0x1b4   :  { %v245_v5 = vpack.c.bf16 %v242_v3, %v239_v1  ;;  %v1304_v6 = vpack.c.bf16 %v242_v3, %v242_v3 }
 0x1b6   :  { %v254_v7 = vrot.slane %v245_v5, %v1633_v22  ;;  %v261_v8 = vrot.slane %v1304_v6, %v1633_v22 }
 0x1b8   :  { %v262_v9 = vcombine.high %v254_v7, %v254_v7  ;;  %v263_v10 = vcombine.high %v261_v8, %v261_v8  ;;  %v270_v11 = vrot.slane %v254_v7, %v1633_v22  ;;  %v277_v12 = vrot.slane %v261_v8, %v1633_v22 }
 0x1ba   :  { %v284_v13 = vrot.slane %v262_v9, %v1633_v22  ;;  %v291_v14 = vrot.slane %v263_v10, %v1633_v22  ;;  %v292_v15 = vcombine.high %v270_v11, %v270_v11  ;;  %v293_v16 = vcombine.high %v277_v12, %v277_v12  ;;  %305 = vst.msk [vmem:[#allocation2] sm:$0x1] %vm304_vm4, %v270_v11 }
 0x1bb   :  { %309 = vst.msk [vmem:[#allocation2 + $0x4] sm:$0x1] %vm304_vm4, %v277_v12 }
 0x1bc   :  { %v294_v17 = vcombine.high %v284_v13, %v284_v13  ;;  %v295_v18 = vcombine.high %v291_v14, %v291_v14  ;;  %306 = vst.msk [vmem:[#allocation2 + $0x1] sm:$0x1] %vm304_vm4, %v284_v13  ;;  %307 = vst.msk [vmem:[#allocation2 + $0x2] sm:$0x1] %vm304_vm4, %v292_v15 }
 0x1bd   :  { %310 = vst.msk [vmem:[#allocation2 + $0x5] sm:$0x1] %vm304_vm4, %v291_v14  ;;  %311 = vst.msk [vmem:[#allocation2 + $0x6] sm:$0x1] %vm304_vm4, %v293_v16 }
 0x1be   :  { %308 = vst.msk [vmem:[#allocation2 + $0x3] sm:$0x1] %vm304_vm4, %v294_v17  ;;  %312 = vst.msk [vmem:[#allocation2 + $0x7] sm:$0x1] %vm304_vm4, %v295_v18 }
 0x1c1   :  { %v380_v19 = vld [vmem:[#allocation2] sm:$0x1] }
 0x1c2   :  { %v381_v20 = vunpack.c.l.bf16 %v380_v19 }
 0x1c3   :  { %v491_v47 = vld [vmem:[#allocation2 + $0x1] sm:$0x1]  ;;  %v588_v11 = vld [vmem:[#allocation2 + $0x2] sm:$0x1] }
 0x1c4   :  { %v382_v21 = vadd.f32 %v381_v20, %v374_v49  ;;  %v492_v48 = vunpack.c.l.bf16 %v491_v47  ;;  %v589_v12 = vunpack.c.l.bf16 %v588_v11 }
 0x1c6   :  { %v1309_v22 = vmul.f32 -1.442695, %v382_v21 }
 0x1c8   :  { %1454 = vpow2.f32 %v1309_v22 }
 0x1d5   :  { %v1455_v23 = vpop.eup %1454 }
 0x1d6   :  { %v386_v24 = vadd.f32 1.0, %v1455_v23 }
 0x1d8   :  { %1456 = vrcp.f32 %v386_v24 }
 0x1e5   :  { %v1457_v25 = vpop.eup %1456 }
 0x1e6   :  { %v404_v27 = vmul.f32 %v1457_v25, %v402_v26  ;;  %v411_v34 = vsub.f32 1.0, %v1457_v25  ;;  %v428_v36 = vmul.f32 %v1457_v25, %v426_v32 }
 0x1e8   :  { %406 = vrot.lane.b32.xlu1 %v404_v27, %s1527_s26 }
 0x25a   :  { %v407_v28 = vpop.permute.xlu1 %406 }
 0x25b   :  { %v409_v29 = vadd.f32 %v407_v28, %v381_v20 }
 0x25d   :  { %1458 = vtanh.f32 %v409_v29 }
 0x26a   :  { %v1459_v30 = vpop.eup %1458 }
 0x26b   :  { %413 = vrot.lane.b32.xlu1 %v1459_v30, %s1530_s6 }
 0x2dd   :  { %v414_v35 = vpop.permute.xlu1 %413 }
 0x2de   :  { %v416_v37 = vmul.f32 %v414_v35, %v411_v34 }
 0x2e0   :  { %v1716_v38 = vadd.f32 %v428_v36, %v416_v37 }
 0x2e2   :  { %v443_v39 = vpack.c.bf16 %v1716_v38, %v1716_v38 }
 0x2e4   :  { %445 = vrot.lane.b32.xlu1 %v443_v39, %s1530_s6  ;;  %v685_v39 = vld [vmem:[#allocation2 + $0x3] sm:$0x1] }
 0x356   :  { %v446_v40 = vpop.permute.xlu1 %445 }
 0x357   :  { %1385 = vmatmul.mubr.msk.bf16.vlgmr.msra.gmra.mxu1 %vm200_vm3, %v446_v40  ;;  %v686_v40 = vunpack.c.l.bf16 %v685_v39 }
 0x358   :  { %1397 = vmatpush3.bf16.msra.mxu1 %v1644_v31  ;;  %1400 = vmatprep.mubr.msk.bf16.mxu1 %vm1525_vm1, %v1524_v2 }
 0x359   :  { %1398 = vmatprep.subr.bf16.mxu1 %v1524_v2 }
 0x35c   :  { %1399 = vmatpush3.bf16.msra.mxu1 %v1650_v33 }
 0x35d   :  { %1412 = vmatprep.subr.bf16.mxu1 %v1524_v2 }
 0x417   :  { %v484_v41 = vpop.f32.mrf.mxu1 }
 0x418   :  { %v500_v42 = vadd.f32 %v484_v41, %v1684_v51  ;;  %v493_v49 = vadd.f32 %v492_v48, %v484_v41 }
 0x419   :  { %v1386_v43 = vpop.f32.mrf.mxu1 }
 0x41a   :  { %v508_v44 = vrot.slane %v500_v42, %v1682_v50  ;;  %v1311_v52 = vmul.f32 -1.442695, %v493_v49 }
 0x41b   :  { %v487_v45 = vpop.f32.mrf.mxu1 }
 0x41c   :  { %509 = vrot.lane.b32.xlu0 %v508_v44, %s1527_s26  ;;  %1460 = vpow2.f32 %v1311_v52 }
 0x41d   :  { %v1387_v46 = vpop.f32.mrf.mxu1 }
 0x429   :  { %v1461_v53 = vpop.eup %1460 }
 0x42a   :  { %v497_v54 = vadd.f32 1.0, %v1461_v53 }
 0x42c   :  { %1462 = vrcp.f32 %v497_v54 }
 0x439   :  { %v1463_v55 = vpop.eup %1462 }
 0x43a   :  { %v519_v61 = vsub.f32 1.0, %v1463_v55  ;;  %v525_v63 = vmul.f32 %v1463_v55, %v1716_v38 }
 0x48e   :  { %v510_v56 = vpop.permute.xlu0 %509 }
 0x48f   :  { %v512_v57 = vmul.f32 %v1463_v55, %v510_v56 }
 0x491   :  { %514 = vrot.lane.b32.xlu1 %v512_v57, %s1527_s26 }
 0x503   :  { %v515_v58 = vpop.permute.xlu1 %514 }
 0x504   :  { %v517_v59 = vadd.f32 %v515_v58, %v492_v48 }
 0x506   :  { %1464 = vtanh.f32 %v517_v59 }
 0x513   :  { %v1465_v60 = vpop.eup %1464 }
 0x514   :  { %521 = vrot.lane.b32.xlu0 %v1465_v60, %s1530_s6 }
 0x586   :  { %v522_v62 = vpop.permute.xlu0 %521 }
 0x587   :  { %v524_v0 = vmul.f32 %v522_v62, %v519_v61 }
 0x589   :  { %v1734_v1 = vadd.f32 %v525_v63, %v524_v0 }
 0x58b   :  { %v540_v3 = vpack.c.bf16 %v1734_v1, %v1734_v1 }
 0x58d   :  { %542 = vrot.lane.b32.xlu1 %v540_v3, %s1530_s6 }
 0x5ff   :  { %v543_v4 = vpop.permute.xlu1 %542 }
 0x600   :  { %1393 = vmatmul.mubr.msk.bf16.vlgmr.msra.gmra.mxu0 %vm200_vm3, %v543_v4  ;;  %v782_v4 = vld [vmem:[#allocation2 + $0x4] sm:$0x1] }
 0x601   :  { %1405 = vmatpush3.bf16.msra.mxu0 %v1644_v31  ;;  %1408 = vmatprep.mubr.msk.bf16.mxu0 %vm1525_vm1, %v1524_v2 }
 0x602   :  { %1406 = vmatprep.subr.bf16.mxu0 %v1524_v2 }
 0x605   :  { %1407 = vmatpush3.bf16.msra.mxu0 %v1650_v33 }
 0x606   :  { %1420 = vmatprep.subr.bf16.mxu0 %v1524_v2 }
 0x6c0   :  { %v581_v5 = vpop.f32.mrf.mxu0 }
 0x6c1   :  { %v597_v6 = vadd.f32 %v581_v5, %v1684_v51  ;;  %v590_v13 = vadd.f32 %v589_v12, %v581_v5  ;;  %v783_v5 = vunpack.c.l.bf16 %v782_v4 }
 0x6c2   :  { %v1394_v7 = vpop.f32.mrf.mxu0 }
 0x6c3   :  { %v605_v8 = vrot.slane %v597_v6, %v1682_v50  ;;  %v1313_v14 = vmul.f32 -1.442695, %v590_v13 }
 0x6c4   :  { %v584_v9 = vpop.f32.mrf.mxu0 }
 0x6c5   :  { %606 = vrot.lane.b32.xlu0 %v605_v8, %s1527_s26  ;;  %1466 = vpow2.f32 %v1313_v14 }
 0x6c6   :  { %v1395_v10 = vpop.f32.mrf.mxu0 }
 0x6d2   :  { %v1467_v15 = vpop.eup %1466 }
 0x6d3   :  { %v594_v16 = vadd.f32 1.0, %v1467_v15 }
 0x6d5   :  { %1468 = vrcp.f32 %v594_v16 }
 0x6e2   :  { %v1469_v17 = vpop.eup %1468 }
 0x6e3   :  { %v616_v23 = vsub.f32 1.0, %v1469_v17  ;;  %v622_v25 = vmul.f32 %v1469_v17, %v1734_v1 }
 0x737   :  { %v607_v18 = vpop.permute.xlu0 %606 }
 0x738   :  { %v609_v19 = vmul.f32 %v1469_v17, %v607_v18 }
 0x73a   :  { %611 = vrot.lane.b32.xlu1 %v609_v19, %s1527_s26 }
 0x7ac   :  { %v612_v20 = vpop.permute.xlu1 %611 }
 0x7ad   :  { %v614_v21 = vadd.f32 %v612_v20, %v589_v12 }
 0x7af   :  { %1470 = vtanh.f32 %v614_v21 }
 0x7bc   :  { %v1471_v22 = vpop.eup %1470 }
 0x7bd   :  { %618 = vrot.lane.b32.xlu0 %v1471_v22, %s1530_s6 }
 0x82f   :  { %v619_v24 = vpop.permute.xlu0 %618 }
 0x830   :  { %v621_v26 = vmul.f32 %v619_v24, %v616_v23 }
 0x832   :  { %v1752_v27 = vadd.f32 %v622_v25, %v621_v26 }
 0x834   :  { %v637_v28 = vpack.c.bf16 %v1752_v27, %v1752_v27 }
 0x836   :  { %639 = vrot.lane.b32.xlu1 %v637_v28, %s1530_s6 }
 0x8a8   :  { %v640_v29 = vpop.permute.xlu1 %639 }
 0x8a9   :  { %1401 = vmatmul.mubr.msk.bf16.vlgmr.msra.gmra.mxu1 %vm200_vm3, %v640_v29 }
 0x8aa   :  { %1413 = vmatpush3.bf16.msra.mxu1 %v1644_v31  ;;  %1416 = vmatprep.mubr.msk.bf16.mxu1 %vm1525_vm1, %v1524_v2 }
 0x8ab   :  { %1414 = vmatprep.subr.bf16.mxu1 %v1524_v2 }
 0x8ae   :  { %1415 = vmatpush3.bf16.msra.mxu1 %v1650_v33 }
 0x8af   :  { %1428 = vmatprep.subr.bf16.mxu1 %v1524_v2 }
 0x969   :  { %v678_v30 = vpop.f32.mrf.mxu1 }
 0x96a   :  { %v694_v32 = vadd.f32 %v678_v30, %v1684_v51  ;;  %v687_v41 = vadd.f32 %v686_v40, %v678_v30  ;;  %v879_v30 = vld [vmem:[#allocation2 + $0x5] sm:$0x1] }
 0x96b   :  { %v1402_v34 = vpop.f32.mrf.mxu1 }
 0x96c   :  { %v702_v35 = vrot.slane %v694_v32, %v1682_v50  ;;  %v1315_v42 = vmul.f32 -1.442695, %v687_v41  ;;  %v880_v32 = vunpack.c.l.bf16 %v879_v30 }
 0x96d   :  { %v681_v36 = vpop.f32.mrf.mxu1 }
 0x96e   :  { %703 = vrot.lane.b32.xlu0 %v702_v35, %s1527_s26  ;;  %1472 = vpow2.f32 %v1315_v42 }
 0x96f   :  { %v1403_v37 = vpop.f32.mrf.mxu1 }
 0x97b   :  { %v1473_v43 = vpop.eup %1472 }
 0x97c   :  { %v691_v44 = vadd.f32 1.0, %v1473_v43 }
 0x97e   :  { %1474 = vrcp.f32 %v691_v44 }
 0x98b   :  { %v1475_v45 = vpop.eup %1474 }
 0x98c   :  { %v713_v53 = vsub.f32 1.0, %v1475_v45  ;;  %v719_v55 = vmul.f32 %v1475_v45, %v1752_v27 }
 0x9e0   :  { %v704_v46 = vpop.permute.xlu0 %703 }
 0x9e1   :  { %v706_v47 = vmul.f32 %v1475_v45, %v704_v46 }
 0x9e3   :  { %708 = vrot.lane.b32.xlu1 %v706_v47, %s1527_s26 }
 0xa55   :  { %v709_v48 = vpop.permute.xlu1 %708 }
 0xa56   :  { %v711_v49 = vadd.f32 %v709_v48, %v686_v40 }
 0xa58   :  { %1476 = vtanh.f32 %v711_v49 }
 0xa65   :  { %v1477_v52 = vpop.eup %1476 }
 0xa66   :  { %715 = vrot.lane.b32.xlu0 %v1477_v52, %s1530_s6 }
 0xad8   :  { %v716_v54 = vpop.permute.xlu0 %715 }
 0xad9   :  { %v718_v56 = vmul.f32 %v716_v54, %v713_v53 }
 0xadb   :  { %v1770_v57 = vadd.f32 %v719_v55, %v718_v56 }
 0xadd   :  { %v734_v58 = vpack.c.bf16 %v1770_v57, %v1770_v57 }
 0xadf   :  { %736 = vrot.lane.b32.xlu1 %v734_v58, %s1530_s6  ;;  %v976_v58 = vld [vmem:[#allocation2 + $0x6] sm:$0x1] }
 0xb51   :  { %v737_v59 = vpop.permute.xlu1 %736 }
 0xb52   :  { %1409 = vmatmul.mubr.msk.bf16.vlgmr.msra.gmra.mxu0 %vm200_vm3, %v737_v59  ;;  %v977_v59 = vunpack.c.l.bf16 %v976_v58 }
 0xb53   :  { %1421 = vmatpush3.bf16.msra.mxu0 %v1644_v31  ;;  %1424 = vmatprep.mubr.msk.bf16.mxu0 %vm1525_vm1, %v1524_v2 }
 0xb54   :  { %1422 = vmatprep.subr.bf16.mxu0 %v1524_v2 }
 0xb57   :  { %1423 = vmatpush3.bf16.msra.mxu0 %v1650_v33 }
 0xc12   :  { %v775_v60 = vpop.f32.mrf.mxu0 }
 0xc13   :  { %v791_v61 = vadd.f32 %v775_v60, %v1684_v51  ;;  %v784_v6 = vadd.f32 %v783_v5, %v775_v60 }
 0xc14   :  { %v1410_v62 = vpop.f32.mrf.mxu0 }
 0xc15   :  { %v799_v63 = vrot.slane %v791_v61, %v1682_v50  ;;  %v1317_v7 = vmul.f32 -1.442695, %v784_v6 }
 0xc16   :  { %v778_v0 = vpop.f32.mrf.mxu0 }
 0xc17   :  { %800 = vrot.lane.b32.xlu0 %v799_v63, %s1527_s26  ;;  %1478 = vpow2.f32 %v1317_v7 }
 0xc18   :  { %v1411_v3 = vpop.f32.mrf.mxu0 }
 0xc24   :  { %v1479_v8 = vpop.eup %1478 }
 0xc25   :  { %v788_v9 = vadd.f32 1.0, %v1479_v8 }
 0xc27   :  { %1480 = vrcp.f32 %v788_v9 }
 0xc34   :  { %v1481_v10 = vpop.eup %1480 }
 0xc35   :  { %v810_v16 = vsub.f32 1.0, %v1481_v10  ;;  %v816_v18 = vmul.f32 %v1481_v10, %v1770_v57 }
 0xc89   :  { %v801_v11 = vpop.permute.xlu0 %800 }
 0xc8a   :  { %v803_v12 = vmul.f32 %v1481_v10, %v801_v11 }
 0xc8c   :  { %805 = vrot.lane.b32.xlu1 %v803_v12, %s1527_s26 }
 0xcfe   :  { %v806_v13 = vpop.permute.xlu1 %805 }
 0xcff   :  { %v808_v14 = vadd.f32 %v806_v13, %v783_v5 }
 0xd01   :  { %1482 = vtanh.f32 %v808_v14 }
 0xd0e   :  { %v1483_v15 = vpop.eup %1482 }
 0xd0f   :  { %812 = vrot.lane.b32.xlu0 %v1483_v15, %s1530_s6 }
 0xd81   :  { %v813_v17 = vpop.permute.xlu0 %812 }
 0xd82   :  { %v815_v19 = vmul.f32 %v813_v17, %v810_v16 }
 0xd84   :  { %v1787_v20 = vadd.f32 %v816_v18, %v815_v19 }
 0xd86   :  { %v831_v21 = vpack.c.bf16 %v1787_v20, %v1787_v20 }
 0xd88   :  { %833 = vrot.lane.b32.xlu1 %v831_v21, %s1530_s6 }
 0xdfa   :  { %v834_v22 = vpop.permute.xlu1 %833 }
 0xdfb   :  { %1417 = vmatmul.mubr.msk.bf16.vlgmr.msra.gmra.mxu1 %vm200_vm3, %v834_v22  ;;  %v1073_v22 = vld [vmem:[#allocation2 + $0x7] sm:$0x1] }
 0xdfc   :  { %1429 = vmatpush3.bf16.msra.mxu1 %v1644_v31  ;;  %1432 = vmatprep.mubr.msk.bf16.mxu1 %vm1525_vm1, %v1524_v2 }
 0xdfd   :  { %1430 = vmatprep.subr.bf16.mxu1 %v1524_v2 }
 0xe00   :  { %1431 = vmatpush3.bf16.msra.mxu1 %v1650_v33 }
 0xebb   :  { %v872_v23 = vpop.f32.mrf.mxu1 }
 0xebc   :  { %v888_v24 = vadd.f32 %v872_v23, %v1684_v51  ;;  %v881_v31 = vadd.f32 %v880_v32, %v872_v23  ;;  %v1074_v23 = vunpack.c.l.bf16 %v1073_v22 }
 0xebd   :  { %v1418_v25 = vpop.f32.mrf.mxu1 }
 0xebe   :  { %v896_v26 = vrot.slane %v888_v24, %v1682_v50  ;;  %v1319_v34 = vmul.f32 -1.442695, %v881_v31  ;;  %v631_v31 = vrot.slane %v1752_v27, %v1682_v50 }
 0xebf   :  { %v875_v28 = vpop.f32.mrf.mxu1 }
 0xec0   :  { %897 = vrot.lane.b32.xlu0 %v896_v26, %s1527_s26  ;;  %1484 = vpow2.f32 %v1319_v34  ;;  %v825_v34 = vrot.slane %v1787_v20, %v1682_v50 }
 0xec1   :  { %v1419_v29 = vpop.f32.mrf.mxu1 }
 0xecd   :  { %v1485_v35 = vpop.eup %1484 }
 0xece   :  { %v885_v36 = vadd.f32 1.0, %v1485_v35 }
 0xed0   :  { %1486 = vrcp.f32 %v885_v36 }
 0xedd   :  { %v1487_v2 = vpop.eup %1486 }
 0xede   :  { %v907_v42 = vsub.f32 1.0, %v1487_v2  ;;  %v913_v44 = vmul.f32 %v1487_v2, %v1787_v20 }
 0xf32   :  { %v898_v33 = vpop.permute.xlu0 %897 }
 0xf33   :  { %v900_v37 = vmul.f32 %v1487_v2, %v898_v33 }
 0xf35   :  { %902 = vrot.lane.b32.xlu1 %v900_v37, %s1527_s26 }
 0xfa7   :  { %v903_v39 = vpop.permute.xlu1 %902 }
 0xfa8   :  { %v905_v40 = vadd.f32 %v903_v39, %v880_v32  ;;  %v534_v39 = vrot.slane %v1734_v1, %v1682_v50  ;;  %v1324_v1 = vld [vmem:[%s1912_s8] ss:$0 sm:$0xff]  ;;  %s1531_s8 = smov [#allocation5]  }
 0xfa9   :  { %s1286_s30 = sshll.u32 %s1531_s8, 4  ;;  %s1287_s30 = int_to_ptr.vmem [resolvable:$true] %s1286_s30 }
 0xfaa   :  { %1488 = vtanh.f32 %v905_v40  ;;  %v728_v40 = vrot.slane %v1770_v57, %v1682_v50  ;;  %s1502_s12 = scalar_lea.vmem %s1287_s30, 32  ;;  %p1507_p1 = scmp.lt.s32.totalorder %s1287_s30, %s1287_s30 }
 0xfab   :  { %p1503_p0 = scmp.ne.s32.totalorder %s1287_s30, %s1502_s12  ;;  %p1508_p2 = scmp.lt.s32.totalorder %s1502_s12, %s1502_s12 }
 0xfad   :  { %p1509_p3 = por %p1508_p2, %p1507_p1 }
 0xfaf   :  { %p1510_p4 = pnand %p1509_p3, %p1503_p0 }
 0xfb7   :  { %v1489_v41 = vpop.eup %1488 }
 0xfb8   :  { %909 = vrot.lane.b32.xlu0 %v1489_v41, %s1530_s6 }
0x102a   :  { %v910_v43 = vpop.permute.xlu0 %909 }
0x102b   :  { %v912_v45 = vmul.f32 %v910_v43, %v907_v42 }
0x102d   :  { %v1804_v46 = vadd.f32 %v913_v44, %v912_v45 }
0x102f   :  { %v928_v47 = vpack.c.bf16 %v1804_v46, %v1804_v46  ;;  %v922_v41 = vrot.slane %v1804_v46, %v1682_v50 }
0x1031   :  { %930 = vrot.lane.b32.xlu1 %v928_v47, %s1530_s6 }
0x10a3   :  { %v931_v48 = vpop.permute.xlu1 %930 }
0x10a4   :  { %1425 = vmatmul.mubr.msk.bf16.vlgmr.msra.gmra.mxu0 %vm200_vm3, %v931_v48 }
0x1164   :  { %v969_v49 = vpop.f32.mrf.mxu0 }
0x1165   :  { %v985_v52 = vadd.f32 %v969_v49, %v1684_v51  ;;  %v978_v60 = vadd.f32 %v977_v59, %v969_v49  ;;  %v1137_v49 = vcombine.high %v1324_v1, %v1324_v1 }
0x1166   :  { %v1426_v53 = vpop.f32.mrf.mxu0 }
0x1167   :  { %v993_v54 = vrot.slane %v985_v52, %v1682_v50  ;;  %v1321_v61 = vmul.f32 -1.442695, %v978_v60 }
0x1168   :  { %v972_v55 = vpop.f32.mrf.mxu0 }
0x1169   :  { %994 = vrot.lane.b32.xlu0 %v993_v54, %s1527_s26  ;;  %1490 = vpow2.f32 %v1321_v61  ;;  %v1151_v54 = vrot.slane %v1137_v49, %v1682_v50 }
0x116a   :  { %v1427_v56 = vpop.f32.mrf.mxu0 }
0x1176   :  { %v1491_v62 = vpop.eup %1490 }
0x1177   :  { %v982_v63 = vadd.f32 1.0, %v1491_v62 }
0x1179   :  { %1492 = vrcp.f32 %v982_v63 }
0x1186   :  { %v1493_v0 = vpop.eup %1492 }
0x1187   :  { %v1004_v8 = vsub.f32 1.0, %v1493_v0  ;;  %v1010_v10 = vmul.f32 %v1493_v0, %v1804_v46  ;;  %v1144_v46 = vrot.slane %v1324_v1, %v1682_v50 }
0x1189   :  { %v1152_v53 = vcombine.high %v1144_v46, %v1144_v46 }
0x11db   :  { %v995_v3 = vpop.permute.xlu0 %994 }
0x11dc   :  { %v997_v4 = vmul.f32 %v1493_v0, %v995_v3 }
0x11de   :  { %999 = vrot.lane.b32.xlu1 %v997_v4, %s1527_s26 }
0x1250   :  { %v1000_v5 = vpop.permute.xlu1 %999 }
0x1251   :  { %v1002_v6 = vadd.f32 %v1000_v5, %v977_v59  ;;  %v1153_v59 = vcombine.high %v1151_v54, %v1151_v54 }
0x1253   :  { %1494 = vtanh.f32 %v1002_v6 }
0x1260   :  { %v1495_v7 = vpop.eup %1494 }
0x1261   :  { %1006 = vrot.lane.b32.xlu0 %v1495_v7, %s1530_s6 }
0x12d3   :  { %v1007_v9 = vpop.permute.xlu0 %1006 }
0x12d4   :  { %v1009_v11 = vmul.f32 %v1007_v9, %v1004_v8 }
0x12d6   :  { %v1011_v12 = vadd.f32 %v1010_v10, %v1009_v11 }
0x12d8   :  { %v1025_v13 = vpack.c.bf16 %v1011_v12, %v1011_v12  ;;  %v1019_v35 = vrot.slane %v1011_v12, %v1682_v50 }
0x12da   :  { %1027 = vrot.lane.b32.xlu1 %v1025_v13, %s1530_s6 }
0x134c   :  { %v1028_v14 = vpop.permute.xlu1 %1027 }
0x134d   :  { %1433 = vmatmul.mubr.msk.bf16.vlgmr.msra.gmra.mxu1 %vm200_vm3, %v1028_v14 }
0x140d   :  { %v1066_v15 = vpop.f32.mrf.mxu1 }
0x140e   :  { %v1082_v16 = vadd.f32 %v1066_v15, %v1684_v51  ;;  %v1075_v24 = vadd.f32 %v1074_v23, %v1066_v15  ;;  %v437_v51 = vrot.slane %v1716_v38, %v1682_v50 }
0x140f   :  { %v1434_v17 = vpop.f32.mrf.mxu1 }
0x1410   :  { %v1090_v18 = vrot.slane %v1082_v16, %v1682_v50  ;;  %v1323_v25 = vmul.f32 -1.442695, %v1075_v24 }
0x1411   :  { %v1069_v19 = vpop.f32.mrf.mxu1 }
0x1412   :  { %1091 = vrot.lane.b32.xlu0 %v1090_v18, %s1527_s26  ;;  %1496 = vpow2.f32 %v1323_v25 }
0x1413   :  { %v1435_v21 = vpop.f32.mrf.mxu1 }
0x141f   :  { %v1497_v26 = vpop.eup %1496 }
0x1420   :  { %v1079_v28 = vadd.f32 1.0, %v1497_v26 }
0x1422   :  { %1498 = vrcp.f32 %v1079_v28 }
0x142f   :  { %v1499_v29 = vpop.eup %1498 }
0x1430   :  { %v1101_v42 = vsub.f32 1.0, %v1499_v29  ;;  %v1107_v44 = vmul.f32 %v1499_v29, %v1011_v12 }
0x1484   :  { %v1092_v30 = vpop.permute.xlu0 %1091 }
0x1485   :  { %v1094_v32 = vmul.f32 %v1499_v29, %v1092_v30 }
0x1487   :  { %1096 = vrot.lane.b32.xlu1 %v1094_v32, %s1527_s26 }
0x148b   :  { %438 = vrot.lane.b32.xlu1 %v437_v51, %s1530_s6 }
0x148f   :  { %632 = vrot.lane.b32.xlu1 %v631_v31, %s1530_s6 }
0x1493   :  { %826 = vrot.lane.b32.xlu1 %v825_v34, %s1530_s6 }
0x1497   :  { %1020 = vrot.lane.b32.xlu1 %v1019_v35, %s1530_s6 }
0x14f9   :  { %v1097_v36 = vpop.permute.xlu1 %1096 }
0x14fa   :  { %v1099_v2 = vadd.f32 %v1097_v36, %v1074_v23 }
0x14fc   :  { %1500 = vtanh.f32 %v1099_v2 }
0x14fd   :  { %v439_v38 = vpop.permute.xlu1 %438 }
0x14fe   :  { %442 = vst.msk [vmem:[#allocation3] sm:$0x3] %vm441_vm5, %v439_v38 }
0x1501   :  { %v633_v33 = vpop.permute.xlu1 %632 }
0x1502   :  { %636 = vst.msk [vmem:[#allocation3 + $0x4] sm:$0x3] %vm441_vm5, %v633_v33 }
0x1505   :  { %v827_v27 = vpop.permute.xlu1 %826  ;;  %v1123_v56 = vld [vmem:[#allocation3] sm:$0x3] }
0x1506   :  { %830 = vst.msk [vmem:[#allocation3 + $0x8] sm:$0x3] %vm441_vm5, %v827_v27  ;;  %v1158_v62 = vmul.f32 %v1144_v46, %v1123_v56 }
0x1509   :  { %v1501_v20 = vpop.eup %1500  ;;  %v1021_v37 = vpop.permute.xlu1 %1020  ;;  %v1125_v61 = vld [vmem:[#allocation3 + $0x4] sm:$0x3] }
0x150a   :  { %1024 = vst.msk [vmem:[#allocation3 + $0xc] sm:$0x3] %vm441_vm5, %v1021_v37  ;;  %1103 = vrot.lane.b32.xlu0 %v1501_v20, %s1530_s6  ;;  %v1160_v0 = vmul.f32 %v1151_v54, %v1125_v61 }
0x150d   :  { %v1127_v5 = vld [vmem:[#allocation3 + $0x8] sm:$0x3] }
0x150e   :  { %535 = vrot.lane.b32.xlu0 %v534_v39, %s1530_s6  ;;  %v1162_v10 = vmul.f32 %v1144_v46, %v1127_v5 }
0x1511   :  { %v1129_v16 = vld [vmem:[#allocation3 + $0xc] sm:$0x3] }
0x1512   :  { %729 = vrot.lane.b32.xlu0 %v728_v40, %s1530_s6  ;;  %v1164_v18 = vmul.f32 %v1151_v54, %v1129_v16 }
0x1516   :  { %923 = vrot.lane.b32.xlu0 %v922_v41, %s1530_s6 }
0x157c   :  { %v1104_v43 = vpop.permute.xlu0 %1103 }
0x157d   :  { %v1106_v45 = vmul.f32 %v1104_v43, %v1101_v42 }
0x157f   :  { %v1108_v47 = vadd.f32 %v1107_v44, %v1106_v45 }
0x1580   :  { %v536_v48 = vpop.permute.xlu0 %535 }
0x1581   :  { %539 = vst.msk [vmem:[#allocation3 + $0x2] sm:$0x3] %vm441_vm5, %v536_v48  ;;  %v1116_v57 = vrot.slane %v1108_v47, %v1682_v50 }
0x1583   :  { %1117 = vrot.lane.b32.xlu0 %v1116_v57, %s1530_s6 }
0x1584   :  { %v730_v52 = vpop.permute.xlu0 %729 }
0x1585   :  { %733 = vst.msk [vmem:[#allocation3 + $0x6] sm:$0x3] %vm441_vm5, %v730_v52 }
0x1588   :  { %v924_v55 = vpop.permute.xlu0 %923  ;;  %v1124_v58 = vld [vmem:[#allocation3 + $0x2] sm:$0x3] }
0x1589   :  { %927 = vst.msk [vmem:[#allocation3 + $0xa] sm:$0x3] %vm441_vm5, %v924_v55  ;;  %v1159_v60 = vmul.f32 %v1152_v53, %v1124_v58 }
0x158b   :  { %v1174_v4 = vcombine.low %v1158_v62, %v1159_v60 }
0x158c   :  { %v1126_v63 = vld [vmem:[#allocation3 + $0x6] sm:$0x3] }
0x158d   :  { %v1161_v3 = vmul.f32 %v1153_v59, %v1126_v63  ;;  %v1182_v8 = vrot.slane %v1174_v4, %v1682_v50 }
0x158f   :  { %v1175_v6 = vcombine.low %v1160_v0, %v1161_v3 }
0x1590   :  { %v1128_v7 = vld [vmem:[#allocation3 + $0xa] sm:$0x3] }
0x1591   :  { %v1189_v9 = vrot.slane %v1175_v6, %v1682_v50  ;;  %v1163_v11 = vmul.f32 %v1152_v53, %v1128_v7 }
0x1593   :  { %v1190_v12 = vcombine.low %v1182_v8, %v1189_v9  ;;  %v1191_v13 = vcombine.low %v1162_v10, %v1163_v11 }
0x1595   :  { %v1210_v14 = vsel %vm200_vm3, %v1190_v12, 0.0  ;;  %v1199_v22 = vrot.slane %v1191_v13, %v1682_v50 }
0x1596   :  { %1211 = vadd.xlane.f32.xlu1 %v1210_v14 }
0x15f5   :  { %v1118_v15 = vpop.permute.xlu0 %1117 }
0x15f6   :  { %1121 = vst.msk [vmem:[#allocation3 + $0xe] sm:$0x3] %vm441_vm5, %v1118_v15  ;;  %1122 = vst.msk [vmem:[#allocation5] sm:$0x3] %vm441_vm5, %v1118_v15 }
0x15fd   :  { %v1130_v17 = vld [vmem:[#allocation3 + $0xe] sm:$0x3] }
0x15fe   :  { %v1165_v19 = vmul.f32 %v1153_v59, %v1130_v17 }
0x1600   :  { %v1192_v21 = vcombine.low %v1164_v18, %v1165_v19 }
0x1602   :  { %v1206_v23 = vrot.slane %v1192_v21, %v1682_v50 }
0x1604   :  { %v1207_v24 = vcombine.low %v1199_v22, %v1206_v23 }
0x1606   :  { %v1213_v25 = vsel %vm200_vm3, %v1207_v24, 0.0 }
0x1607   :  { %1214 = vadd.xlane.f32.xlu0 %v1213_v25 }
0x1608   :  { %1513 = shalt.err (!%p1510_p4)
}
0x1609   :  { %1289 = dma.vmem_to_hbm [thread:$0]  %s1287_s30, 32, %s1915_s11, [#allocation6]   ;;  %v1325_v26 = vld [vmem:[#allocation4] ss:$0 sm:$0xff]  ;;  %vm1269_vm6 = vcmask 1024  }
0x161f   :  { %v1212_v28 = vpop.xlane.xlu1 %1211 }
0x1620   :  { %v1223_v29 = vadd.f32 %v1325_v26, %v1212_v28 }
0x1622   :  { %v1227_v30 = vcombine.high %v1223_v29, %v1223_v29  ;;  %v1234_v32 = vrot.slane %v1223_v29, %v1682_v50 }
0x1624   :  { %v1241_v51 = vrot.slane %v1227_v30, %v1682_v50  ;;  %v1242_v31 = vcombine.high %v1234_v32, %v1234_v32  ;;  %1270 = vst.msk [vmem:[%s1914_s10] sm:$0x3] %vm1269_vm6, %v1234_v32 }
0x1626   :  { %v1243_v34 = vcombine.high %v1241_v51, %v1241_v51  ;;  %1271 = vst.msk [vmem:[%s1914_s10 + $0x2] sm:$0x3] %vm1269_vm6, %v1242_v31  ;;  %1272 = vst.msk [vmem:[%s1914_s10 + $0x4] sm:$0x3] %vm1269_vm6, %v1241_v51 }
0x1628   :  { %1273 = vst.msk [vmem:[%s1914_s10 + $0x6] sm:$0x3] %vm1269_vm6, %v1243_v34 }
0x1690   :  { %v1215_v35 = vpop.xlane.xlu0 %1214 }
0x1691   :  { %v1224_v36 = vadd.f32 %v1325_v26, %v1215_v35 }
0x1693   :  { %v1244_v2 = vcombine.high %v1224_v36, %v1224_v36  ;;  %v1251_v38 = vrot.slane %v1224_v36, %v1682_v50 }
0x1695   :  { %v1258_v33 = vrot.slane %v1244_v2, %v1682_v50  ;;  %v1259_v27 = vcombine.high %v1251_v38, %v1251_v38  ;;  %1274 = vst.msk [vmem:[%s1914_s10 + $0x8] sm:$0x3] %vm1269_vm6, %v1251_v38 }
0x1697   :  { %v1260_v20 = vcombine.high %v1258_v33, %v1258_v33  ;;  %1275 = vst.msk [vmem:[%s1914_s10 + $0xa] sm:$0x3] %vm1269_vm6, %v1259_v27  ;;  %1276 = vst.msk [vmem:[%s1914_s10 + $0xc] sm:$0x3] %vm1269_vm6, %v1258_v33 }
0x1699   :  { %1277 = vst.msk [vmem:[%s1914_s10 + $0xe] sm:$0x3] %vm1269_vm6, %v1260_v20 }
0x169a   :  { %1522 = dma.done.wait [#allocation6], 32  }
0x169b   :  { %1523 = vsyncadd [#allocation6], 4294967264 }
0x169c   :  { %1295 = vsyncpa [#allocation6], 1 }

</bundles_post_ra>
